<compile_context>
chip_gen: v7x
topology: tpu7x:2x2x1
jax: 0.10.0
libtpu: 0.0.40
codegen_flags: <defaults>
</compile_context>

<pallas_src>
import functools

import jax
import jax.numpy as jnp
from jax.experimental import pallas as pl
from jax.experimental.pallas import tpu as pltpu

_MiB = 1024 * 1024


# ---------------------------------------------------------------------------
# Pass 1: GroupNorm statistics — single sweep, accumulate sum and sum-of-squares
# ---------------------------------------------------------------------------
def _gn_stats_kernel(x_ref, s1_ref, s2_ref):
    t = pl.program_id(1)
    x = x_ref[0].astype(jnp.float32)                        # (C, thw) channels-first

    @pl.when(t == 0)
    def _():
        s1_ref[...] = jnp.zeros(s1_ref.shape, s1_ref.dtype)
        s2_ref[...] = jnp.zeros(s2_ref.shape, s2_ref.dtype)

    s1_ref[0] += jnp.sum(x, axis=1, keepdims=True)          # per-channel sum      (C, 1)
    s2_ref[0] += jnp.sum(x * x, axis=1, keepdims=True)      # per-channel sum(x^2) (C, 1)


# ---------------------------------------------------------------------------
# Pass 2: GroupNorm apply + fused q/k/v projection (single (C, 3C) bf16 matmul)
# ---------------------------------------------------------------------------
def _qkv_kernel(x_ref, mean_ref, inv_ref, gamma_ref, beta_ref,
                wqkv_ref, bqkv_ref, q_ref, k_ref, v_ref):
    x = x_ref[0].astype(jnp.float32)                        # (C, thw)
    xn = (x - mean_ref[0]) * (inv_ref[0] * gamma_ref[...]) + beta_ref[...]
    # (thw, 3C) = xn^T @ wqkv : contract over C (dim 0 of both operands)
    qkv = jax.lax.dot_general(
        xn.astype(jnp.bfloat16), wqkv_ref[...],
        (((0,), (0,)), ((), ())),
        preferred_element_type=jnp.float32) + bqkv_ref[...]
    c = q_ref.shape[-1]
    q_ref[0] = qkv[:, :c].astype(q_ref.dtype)
    k_ref[0] = qkv[:, c:2 * c].astype(k_ref.dtype)
    v_ref[0] = qkv[:, 2 * c:].astype(v_ref.dtype)


# ---------------------------------------------------------------------------
# Pass 3: flash attention (online softmax, VMEM-resident K/V) + proj_out + residual
# ---------------------------------------------------------------------------
def _attn_kernel(x_ref, q_ref, k_ref, v_ref, wp_ref, bp_ref, o_ref,
                 m_sc, l_sc, acc_sc, *, kv_resident, tk):
    ki = pl.program_id(2)

    @pl.when(ki == 0)
    def _():
        m_sc[...] = jnp.full(m_sc.shape, -jnp.inf, m_sc.dtype)
        l_sc[...] = jnp.zeros(l_sc.shape, l_sc.dtype)
        acc_sc[...] = jnp.zeros(acc_sc.shape, acc_sc.dtype)

    q = q_ref[0]                                            # (tq, C) bf16, 1/sqrt(C) folded
    if kv_resident:
        # K/V hold the full (HW, C) per batch in VMEM; ki only selects the chunk.
        start = pl.multiple_of(ki * tk, tk)
        k = k_ref[0, pl.ds(start, tk), :]                   # (tk, C)
        v = v_ref[0, pl.ds(start, tk), :]                   # (tk, C)
    else:
        k = k_ref[0]
        v = v_ref[0]

    # logits: contract over C for both operands (no explicit transpose of k)
    s = jax.lax.dot_general(q, k, (((1,), (1,)), ((), ())),
                            preferred_element_type=jnp.float32)       # (tq, tk)

    m_prev = m_sc[...]
    m_new = jnp.maximum(m_prev, jnp.max(s, axis=-1, keepdims=True))
    alpha = jnp.exp(m_prev - m_new)
    p = jnp.exp(s - m_new)
    l_sc[...] = alpha * l_sc[...] + jnp.sum(p, axis=-1, keepdims=True)
    acc_sc[...] = alpha * acc_sc[...] + jnp.dot(
        p.astype(jnp.bfloat16), v, preferred_element_type=jnp.float32)
    m_sc[...] = m_new

    @pl.when(ki == pl.num_programs(2) - 1)
    def _():
        attn = acc_sc[...] * pl.reciprocal(l_sc[...], approx=False)   # exact reciprocal
        # h^T (C, tq): conv-layout proj weight (C_out, C_in) contracted with attn over C_in
        h_t = jax.lax.dot_general(wp_ref[...], attn.astype(jnp.bfloat16),
                                  (((1,), (1,)), ((), ())),
                                  preferred_element_type=jnp.float32) + bp_ref[...]
        o_ref[0] = (x_ref[0].astype(jnp.float32) + h_t).astype(o_ref.dtype)


# ---------------------------------------------------------------------------
# Wrapper
# ---------------------------------------------------------------------------
def _pick_tile(n, target, *, lane_aligned):
    """Largest divisor of n <= target, preferring 256- then 128-multiples.

    lane_aligned tiles are used as the minor (lane) dim of an HBM block, so they
    must be 128-multiples (or the full axis) to satisfy the (8, 128) constraint.
    """
    if n <= target:
        return n
    aligns = (256, 128) if lane_aligned else (256, 128, 8)
    for align in aligns:
        best = 0
        for cand in range(align, target + 1, align):
            if n % cand == 0:
                best = cand
        if best:
            return best
    # TODO(synk): pad HW and mask a tail tile instead of falling back to the full axis.
    return n


def attn_block_pallas(x_nchw, params, *, num_groups=32, eps=1e-6,
                      stats_tile=2048, hw_tile=512, kv_tile=1024):
    """x_nchw: (B, C, H, W) float32.  Returns (B, C, H, W)."""
    B, C, H, W = x_nchw.shape
    HW = H * W
    assert C % num_groups == 0
    cg = C // num_groups

    # Channels-first (B, C, HW): a free reshape, no XLA transpose round trips.
    x = x_nchw.reshape(B, C, HW)

    ts = _pick_tile(HW, stats_tile, lane_aligned=True)     # pass 1 (pure HBM streaming)
    thw = _pick_tile(HW, hw_tile, lane_aligned=True)       # pass 2
    tk = _pick_tile(HW, kv_tile, lane_aligned=False)       # kv chunk (1024: fewer softmax steps)

    # ---- attention tiling plan: K/V VMEM-resident per batch when it fits ----
    def _plan(resident):
        tq = _pick_tile(HW, 512 if resident else 1024, lane_aligned=True)
        kv_bytes = (2 * HW * C * 2) if resident else (2 * tk * C * 2)   # K + V, bf16
        kv_bytes *= 2                                                   # double-buffered
        est = (kv_bytes
               + 2 * tq * C * 2                       # q blocks (bf16)
               + 2 * 2 * C * tq * 4                   # x + out blocks (f32)
               + 2 * C * C * 2                        # proj weight
               + tq * C * 4 + 2 * tq * 4              # acc / m / l scratch
               + 2 * tq * tk * 4)                     # logits / probs headroom
        return tq, est

    kv_resident = True
    tq, est3 = _plan(True)
    if est3 > 40 * _MiB:                # v7x has only 64 MiB VMEM -> streamed fallback
        kv_resident = False
        tq, est3 = _plan(False)
    vmem3 = min(48 * _MiB, max(32 * _MiB, int(est3 * 1.25)))

    scale = float(C) ** (-0.5)
    gamma = params["gamma"].reshape(C, 1).astype(jnp.float32)
    beta = params["beta"].reshape(C, 1).astype(jnp.float32)
    # Conv2d 1x1 weight (C_out, C_in, 1, 1) -> matmul weight (C_in, C_out); q|k|v fused
    # into one (C, 3C) matrix with the 1/sqrt(C) scale folded into the q projection.
    wq = params["wq"].reshape(C, C).T * scale
    wk = params["wk"].reshape(C, C).T
    wv = params["wv"].reshape(C, C).T
    wqkv = jnp.concatenate([wq, wk, wv], axis=1).astype(jnp.bfloat16)           # (C, 3C)
    bqkv = jnp.concatenate([params["bq"] * scale, params["bk"], params["bv"]]
                           ).reshape(1, 3 * C).astype(jnp.float32)
    wp = params["wp"].reshape(C, C).astype(jnp.bfloat16)       # conv layout (C_out, C_in)
    bp = params["bp"].reshape(C, 1).astype(jnp.float32)

    # ---- pass 1: single-sweep GroupNorm statistics ----
    s1, s2 = pl.pallas_call(
        _gn_stats_kernel,
        out_shape=(jax.ShapeDtypeStruct((B, C, 1), jnp.float32),
                   jax.ShapeDtypeStruct((B, C, 1), jnp.float32)),
        grid_spec=pltpu.PrefetchScalarGridSpec(
            num_scalar_prefetch=0,
            grid=(B, HW // ts),
            in_specs=[pl.BlockSpec((1, C, ts), lambda b, t: (b, 0, t))],
            out_specs=[pl.BlockSpec((1, C, 1), lambda b, t: (b, 0, 0)),
                       pl.BlockSpec((1, C, 1), lambda b, t: (b, 0, 0))]),
        compiler_params=pltpu.CompilerParams(
            dimension_semantics=("parallel", "arbitrary"),
            vmem_limit_bytes=32 * _MiB),
    )(x)

    # tiny XLA fold: per-group mean / rsqrt(var + eps), broadcast back per channel
    cnt = float(cg * HW)
    sum_g = s1.reshape(B, num_groups, cg).sum(axis=2)
    sq_g = s2.reshape(B, num_groups, cg).sum(axis=2)
    mean_g = sum_g / cnt
    var_g = jnp.maximum(sq_g / cnt - mean_g * mean_g, 0.0)
    inv_g = jax.lax.rsqrt(var_g + eps)
    mean = jnp.repeat(mean_g, cg, axis=1).reshape(B, C, 1)
    inv = jnp.repeat(inv_g, cg, axis=1).reshape(B, C, 1)

    # ---- pass 2: normalize + fused q/k/v projection (bf16 operands, f32 accum) ----
    # NOTE: constant-index weight blocks are left on default double-buffering; switching
    # them to pl.Buffered(1) is only a VMEM-headroom tweak.
    q, k, v = pl.pallas_call(
        _qkv_kernel,
        out_shape=tuple(jax.ShapeDtypeStruct((B, HW, C), jnp.bfloat16) for _ in range(3)),
        grid_spec=pltpu.PrefetchScalarGridSpec(
            num_scalar_prefetch=0,
            grid=(B, HW // thw),
            in_specs=[pl.BlockSpec((1, C, thw), lambda b, t: (b, 0, t)),
                      pl.BlockSpec((1, C, 1), lambda b, t: (b, 0, 0)),
                      pl.BlockSpec((1, C, 1), lambda b, t: (b, 0, 0)),
                      pl.BlockSpec((C, 1), lambda b, t: (0, 0)),
                      pl.BlockSpec((C, 1), lambda b, t: (0, 0)),
                      pl.BlockSpec((C, 3 * C), lambda b, t: (0, 0)),
                      pl.BlockSpec((1, 3 * C), lambda b, t: (0, 0))],
            out_specs=[pl.BlockSpec((1, thw, C), lambda b, t: (b, t, 0))
                       for _ in range(3)]),
        compiler_params=pltpu.CompilerParams(
            dimension_semantics=("parallel", "parallel"),
            vmem_limit_bytes=32 * _MiB),
    )(x, mean, inv, gamma, beta, wqkv, bqkv)

    # ---- pass 3: flash attention (resident K/V) + proj_out + residual ----
    if kv_resident:
        kv_spec = pl.BlockSpec((1, HW, C), lambda b, qi, ki: (b, 0, 0))
    else:
        kv_spec = pl.BlockSpec((1, tk, C), lambda b, qi, ki: (b, ki, 0))

    out = pl.pallas_call(
        functools.partial(_attn_kernel, kv_resident=kv_resident, tk=tk),
        out_shape=jax.ShapeDtypeStruct((B, C, HW), x.dtype),
        grid_spec=pltpu.PrefetchScalarGridSpec(
            num_scalar_prefetch=0,
            grid=(B, HW // tq, HW // tk),
            in_specs=[pl.BlockSpec((1, C, tq), lambda b, qi, ki: (b, 0, qi)),
                      pl.BlockSpec((1, tq, C), lambda b, qi, ki: (b, qi, 0)),
                      kv_spec,
                      kv_spec,
                      pl.BlockSpec((C, C), lambda b, qi, ki: (0, 0)),
                      pl.BlockSpec((C, 1), lambda b, qi, ki: (0, 0))],
            out_specs=pl.BlockSpec((1, C, tq), lambda b, qi, ki: (b, 0, qi)),
            scratch_shapes=[pltpu.VMEM((tq, 1), jnp.float32),
                            pltpu.VMEM((tq, 1), jnp.float32),
                            pltpu.VMEM((tq, C), jnp.float32)]),
        compiler_params=pltpu.CompilerParams(
            dimension_semantics=("parallel", "parallel", "arbitrary"),
            vmem_limit_bytes=vmem3),
    )(x, q, k, v, wp, bp)

    return out.reshape(B, C, H, W)


# ---------------------------------------------------------------------------
# Pure-JAX reference (mirrors the PyTorch module) + parameter init
# ---------------------------------------------------------------------------
def attn_block_ref(x, params, *, num_groups=32, eps=1e-6):
    B, C, H, W = x.shape
    hp = jax.lax.Precision.HIGHEST
    xg = x.reshape(B, num_groups, -1)
    mean = xg.mean(axis=2, keepdims=True)
    var = ((xg - mean) ** 2).mean(axis=2, keepdims=True)
    h = ((xg - mean) / jnp.sqrt(var + eps)).reshape(B, C, H, W)
    h = h * params["gamma"].reshape(1, C, 1, 1) + params["beta"].reshape(1, C, 1, 1)

    def conv1x1(t, w, b):
        return (jnp.einsum("oc,bchw->bohw", w.reshape(C, C), t, precision=hp)
                + b.reshape(1, C, 1, 1))

    q = conv1x1(h, params["wq"], params["bq"])
    k = conv1x1(h, params["wk"], params["bk"])
    v = conv1x1(h, params["wv"], params["bv"])
    HW = H * W
    q = q.reshape(B, C, HW).transpose(0, 2, 1)
    k = k.reshape(B, C, HW)
    w_ = jnp.einsum("bqc,bck->bqk", q, k, precision=hp) * (float(C) ** (-0.5))
    w_ = jax.nn.softmax(w_, axis=2)
    v = v.reshape(B, C, HW)
    h_ = jnp.einsum("bck,bqk->bcq", v, w_, precision=hp).reshape(B, C, H, W)
    h_ = conv1x1(h_, params["wp"], params["bp"])
    return x + h_


def init_params(key, C):
    """Deterministic synthetic parameters matching AttnBlock.__init__ shapes."""
    ks = jax.random.split(key, 8)
    bound = 1.0 / (C ** 0.5)  # PyTorch Conv2d default init range

    def w(k):
        return jax.random.uniform(k, (C, C, 1, 1), jnp.float32, -bound, bound)

    def b(k):
        return jax.random.uniform(k, (C,), jnp.float32, -bound, bound)

    return {
        "gamma": jnp.ones((C,), jnp.float32),   # GroupNorm affine defaults
        "beta": jnp.zeros((C,), jnp.float32),
        "wq": w(ks[0]), "bq": b(ks[1]),
        "wk": w(ks[2]), "bk": b(ks[3]),
        "wv": w(ks[4]), "bv": b(ks[5]),
        "wp": w(ks[6]), "bp": b(ks[7]),
    }


if __name__ == "__main__":
    # GroupNorm(32) requires C % 32 == 0; C=128 also keeps every lane dim 128-aligned.
    B, C, H, W = 2, 128, 8, 8
    key = jax.random.PRNGKey(0)
    kx, kp = jax.random.split(key)
    x = jax.random.normal(kx, (B, C, H, W), jnp.float32)
    params = init_params(kp, C)

    y = jax.jit(attn_block_pallas)(x, params)
    jax.block_until_ready(y)
    assert y.shape == (B, C, H, W)

    y_ref = attn_block_ref(x, params)
    err = float(jnp.max(jnp.abs(y - y_ref)))
    assert err < 1e-1, f"max abs err {err}"   # bf16-MXU tolerance; logic bugs would be O(1)
    print("KERNEL_OK")
</pallas_src>

<mosaic_0001>
module attributes {stable_mosaic.version = 11 : i64} {
  func.func @_gn_stats_kernel(%arg0: i32, %arg1: i32, %arg2: memref<1x128x64xf32, #tpu.memory_space<vmem>>, %arg3: memref<1x128x1xf32, #tpu.memory_space<vmem>>, %arg4: memref<1x128x1xf32, #tpu.memory_space<vmem>>) attributes {dimension_semantics = [#tpu.dimension_semantics<parallel>, #tpu.dimension_semantics<arbitrary>], iteration_bounds = array<i64: 2, 1>, scalar_prefetch = 0 : i64, scratch_operands = 0 : i64, tpu.core_type = #tpu.core_type<tc>, window_params = [{transform_indices = @transform_0, window_bounds = array<i64: 1, 128, 64>}, {transform_indices = @transform_1, window_bounds = array<i64: 1, 128, 1>}, {transform_indices = @transform_2, window_bounds = array<i64: 1, 128, 1>}]} {
    %c0 = arith.constant 0 : index
    %c0_0 = arith.constant 0 : index
    %c0_1 = arith.constant 0 : index
    %0 = vector.load %arg2[%c0, %c0_0, %c0_1] : memref<1x128x64xf32, #tpu.memory_space<vmem>>, vector<1x128x64xf32>
    %1 = vector.shape_cast %0 : vector<1x128x64xf32> to vector<128x64xf32>
    %c0_i32 = arith.constant 0 : i32
    %2 = arith.cmpi eq, %arg1, %c0_i32 : i32
    %3 = arith.extui %2 : i1 to i32
    %c0_i32_2 = arith.constant 0 : i32
    %4 = arith.cmpi ne, %3, %c0_i32_2 : i32
    scf.if %4 {
      %cst_16 = arith.constant 0.000000e+00 : f32
      %22 = vector.broadcast %cst_16 : f32 to vector<1x128x1xf32>
      %c0_17 = arith.constant 0 : index
      %c0_18 = arith.constant 0 : index
      %c0_19 = arith.constant 0 : index
      %23 = vector.load %arg3[%c0_17, %c0_18, %c0_19] : memref<1x128x1xf32, #tpu.memory_space<vmem>>, vector<1x128x1xf32>
      tpu.vector_store %arg3[%c0_17, %c0_18, %c0_19], %22 {strides = array<i32>} : memref<1x128x1xf32, #tpu.memory_space<vmem>>, vector<1x128x1xf32>,
      %cst_20 = arith.constant 0.000000e+00 : f32
      %24 = vector.broadcast %cst_20 : f32 to vector<1x128x1xf32>
      %c0_21 = arith.constant 0 : index
      %c0_22 = arith.constant 0 : index
      %c0_23 = arith.constant 0 : index
      %25 = vector.load %arg4[%c0_21, %c0_22, %c0_23] : memref<1x128x1xf32, #tpu.memory_space<vmem>>, vector<1x128x1xf32>
      tpu.vector_store %arg4[%c0_21, %c0_22, %c0_23], %24 {strides = array<i32>} : memref<1x128x1xf32, #tpu.memory_space<vmem>>, vector<1x128x1xf32>,
    } else {
    }
    %c0_3 = arith.constant 0 : index
    %c0_4 = arith.constant 0 : index
    %c0_5 = arith.constant 0 : index
    %5 = vector.load %arg3[%c0_3, %c0_4, %c0_5] : memref<1x128x1xf32, #tpu.memory_space<vmem>>, vector<1x128x1xf32>
    %6 = vector.shape_cast %5 : vector<1x128x1xf32> to vector<128x1xf32>
    %cst = arith.constant dense<0.000000e+00> : vector<128xf32>
    %7 = vector.multi_reduction <add>, %1, %cst [1] : vector<128x64xf32> to vector<128xf32>
    %8 = vector.shape_cast %7 : vector<128xf32> to vector<128x1xf32>
    %9 = arith.addf %6, %8 : vector<128x1xf32>
    %c0_6 = arith.constant 0 : index
    %c0_7 = arith.constant 0 : index
    %c0_8 = arith.constant 0 : index
    %10 = vector.load %arg3[%c0_6, %c0_7, %c0_8] : memref<1x128x1xf32, #tpu.memory_space<vmem>>, vector<1x128x1xf32>
    %11 = vector.shape_cast %10 : vector<1x128x1xf32> to vector<128x1xf32>
    %12 = vector.shape_cast %9 : vector<128x1xf32> to vector<1x128x1xf32>
    tpu.vector_store %arg3[%c0_6, %c0_7, %c0_8], %12 {strides = array<i32>} : memref<1x128x1xf32, #tpu.memory_space<vmem>>, vector<1x128x1xf32>,
    %c0_9 = arith.constant 0 : index
    %c0_10 = arith.constant 0 : index
    %c0_11 = arith.constant 0 : index
    %13 = vector.load %arg4[%c0_9, %c0_10, %c0_11] : memref<1x128x1xf32, #tpu.memory_space<vmem>>, vector<1x128x1xf32>
    %14 = vector.shape_cast %13 : vector<1x128x1xf32> to vector<128x1xf32>
    %15 = arith.mulf %1, %1 : vector<128x64xf32>
    %cst_12 = arith.constant dense<0.000000e+00> : vector<128xf32>
    %16 = vector.multi_reduction <add>, %15, %cst_12 [1] : vector<128x64xf32> to vector<128xf32>
    %17 = vector.shape_cast %16 : vector<128xf32> to vector<128x1xf32>
    %18 = arith.addf %14, %17 : vector<128x1xf32>
    %c0_13 = arith.constant 0 : index
    %c0_14 = arith.constant 0 : index
    %c0_15 = arith.constant 0 : index
    %19 = vector.load %arg4[%c0_13, %c0_14, %c0_15] : memref<1x128x1xf32, #tpu.memory_space<vmem>>, vector<1x128x1xf32>
    %20 = vector.shape_cast %19 : vector<1x128x1xf32> to vector<128x1xf32>
    %21 = vector.shape_cast %18 : vector<128x1xf32> to vector<1x128x1xf32>
    tpu.vector_store %arg4[%c0_13, %c0_14, %c0_15], %21 {strides = array<i32>} : memref<1x128x1xf32, #tpu.memory_space<vmem>>, vector<1x128x1xf32>,
    return
  }
  func.func @transform_0(%arg0: i32, %arg1: i32) -> (i32, i32, i32) {
    %c0_i32 = arith.constant 0 : i32
    %c0_i32_0 = arith.constant 0 : i32
    return %arg0, %c0_i32, %arg1 : i32, i32, i32
  }
  func.func @transform_1(%arg0: i32, %arg1: i32) -> (i32, i32, i32) {
    %c0_i32 = arith.constant 0 : i32
    %c0_i32_0 = arith.constant 0 : i32
    %c0_i32_1 = arith.constant 0 : i32
    return %arg0, %c0_i32, %c0_i32_0 : i32, i32, i32
  }
  func.func @transform_2(%arg0: i32, %arg1: i32) -> (i32, i32, i32) {
    %c0_i32 = arith.constant 0 : i32
    %c0_i32_0 = arith.constant 0 : i32
    %c0_i32_1 = arith.constant 0 : i32
    return %arg0, %c0_i32, %c0_i32_0 : i32, i32, i32
  }
}

module attributes {stable_mosaic.version = 11 : i64} {
  func.func @_attn_kernel(%arg0: i32, %arg1: i32, %arg2: i32, %arg3: memref<1x128x64xf32, #tpu.memory_space<vmem>>, %arg4: memref<1x64x128xbf16, #tpu.memory_space<vmem>>, %arg5: memref<1x64x128xbf16, #tpu.memory_space<vmem>>, %arg6: memref<1x64x128xbf16, #tpu.memory_space<vmem>>, %arg7: memref<128x128xbf16, #tpu.memory_space<vmem>>, %arg8: memref<128x1xf32, #tpu.memory_space<vmem>>, %arg9: memref<1x128x64xf32, #tpu.memory_space<vmem>>, %arg10: memref<64x1xf32, #tpu.memory_space<vmem>>, %arg11: memref<64x1xf32, #tpu.memory_space<vmem>>, %arg12: memref<64x128xf32, #tpu.memory_space<vmem>>) attributes {dimension_semantics = [#tpu.dimension_semantics<parallel>, #tpu.dimension_semantics<parallel>, #tpu.dimension_semantics<arbitrary>], iteration_bounds = array<i64: 2, 1, 1>, scalar_prefetch = 0 : i64, scratch_operands = 3 : i64, tpu.core_type = #tpu.core_type<tc>, window_params = [{transform_indices = @transform_0, window_bounds = array<i64: 1, 128, 64>}, {transform_indices = @transform_1, window_bounds = array<i64: 1, 64, 128>}, {transform_indices = @transform_2, window_bounds = array<i64: 1, 64, 128>}, {transform_indices = @transform_3, window_bounds = array<i64: 1, 64, 128>}, {pipeline_mode = #tpu.pipeline_mode<synchronous>, transform_indices = @transform_4, window_bounds = array<i64: 128, 128>}, {pipeline_mode = #tpu.pipeline_mode<synchronous>, transform_indices = @transform_5, window_bounds = array<i64: 128, 1>}, {transform_indices = @transform_6, window_bounds = array<i64: 1, 128, 64>}]} {
    %c0_i32 = arith.constant 0 : i32
    %0 = arith.cmpi eq, %arg2, %c0_i32 : i32
    %1 = arith.extui %0 : i1 to i32
    %c0_i32_0 = arith.constant 0 : i32
    %2 = arith.cmpi ne, %1, %c0_i32_0 : i32
    scf.if %2 {
      %cst_24 = arith.constant 0xFF800000 : f32
      %40 = vector.broadcast %cst_24 : f32 to vector<64x1xf32>
      %c0_25 = arith.constant 0 : index
      %c0_26 = arith.constant 0 : index
      %41 = vector.load %arg10[%c0_25, %c0_26] : memref<64x1xf32, #tpu.memory_space<vmem>>, vector<64x1xf32>
      tpu.vector_store %arg10[%c0_25, %c0_26], %40 {strides = array<i32>} : memref<64x1xf32, #tpu.memory_space<vmem>>, vector<64x1xf32>,
      %cst_27 = arith.constant 0.000000e+00 : f32
      %42 = vector.broadcast %cst_27 : f32 to vector<64x1xf32>
      %c0_28 = arith.constant 0 : index
      %c0_29 = arith.constant 0 : index
      %43 = vector.load %arg11[%c0_28, %c0_29] : memref<64x1xf32, #tpu.memory_space<vmem>>, vector<64x1xf32>
      tpu.vector_store %arg11[%c0_28, %c0_29], %42 {strides = array<i32>} : memref<64x1xf32, #tpu.memory_space<vmem>>, vector<64x1xf32>,
      %cst_30 = arith.constant 0.000000e+00 : f32
      %44 = vector.broadcast %cst_30 : f32 to vector<64x128xf32>
      %c0_31 = arith.constant 0 : index
      %c0_32 = arith.constant 0 : index
      %45 = vector.load %arg12[%c0_31, %c0_32] : memref<64x128xf32, #tpu.memory_space<vmem>>, vector<64x128xf32>
      tpu.vector_store %arg12[%c0_31, %c0_32], %44 {strides = array<i32>} : memref<64x128xf32, #tpu.memory_space<vmem>>, vector<64x128xf32>,
    } else {
    }
    %c0 = arith.constant 0 : index
    %c0_1 = arith.constant 0 : index
    %c0_2 = arith.constant 0 : index
    %3 = vector.load %arg4[%c0, %c0_1, %c0_2] : memref<1x64x128xbf16, #tpu.memory_space<vmem>>, vector<1x64x128xbf16>
    %4 = vector.shape_cast %3 : vector<1x64x128xbf16> to vector<64x128xbf16>
    %c64_i32 = arith.constant 64 : i32
    %5 = arith.muli %arg2, %c64_i32 : i32
    %6 = tpu.assume_multiple %5, 64 : i32
    %c0_3 = arith.constant 0 : index
    %7 = arith.index_cast %6 : i32 to index
    %c0_4 = arith.constant 0 : index
    %8 = vector.load %arg5[%c0_3, %7, %c0_4] : memref<1x64x128xbf16, #tpu.memory_space<vmem>>, vector<1x64x128xbf16>
    %9 = vector.shape_cast %8 : vector<1x64x128xbf16> to vector<64x128xbf16>
    %c0_5 = arith.constant 0 : index
    %10 = arith.index_cast %6 : i32 to index
    %c0_6 = arith.constant 0 : index
    %11 = vector.load %arg6[%c0_5, %10, %c0_6] : memref<1x64x128xbf16, #tpu.memory_space<vmem>>, vector<1x64x128xbf16>
    %12 = vector.shape_cast %11 : vector<1x64x128xbf16> to vector<64x128xbf16>
    %cst = arith.constant dense<0.000000e+00> : vector<64x64xf32>
    %13 = tpu.matmul %4, %9, %cst {dimension_numbers = #tpu.dot_dimension_numbers<[1], [1], [0], [0], [0, 0, 1, 0], [], []>} : vector<64x128xbf16>, vector<64x128xbf16>, vector<64x64xf32> -> vector<64x64xf32>
    %c0_7 = arith.constant 0 : index
    %c0_8 = arith.constant 0 : index
    %14 = vector.load %arg10[%c0_7, %c0_8] : memref<64x1xf32, #tpu.memory_space<vmem>>, vector<64x1xf32>
    %cst_9 = arith.constant dense<0xFF800000> : vector<64xf32>
    %15 = vector.multi_reduction <maximumf>, %13, %cst_9 [1] : vector<64x64xf32> to vector<64xf32>
    %16 = vector.shape_cast %15 : vector<64xf32> to vector<64x1xf32>
    %17 = arith.maximumf %14, %16 : vector<64x1xf32>
    %18 = arith.subf %14, %17 : vector<64x1xf32>
    %19 = math.exp %18 : vector<64x1xf32>
    %20 = vector.broadcast %17 : vector<64x1xf32> to vector<64x64xf32>
    %21 = arith.subf %13, %20 : vector<64x64xf32>
    %22 = math.exp %21 : vector<64x64xf32>
    %c0_10 = arith.constant 0 : index
    %c0_11 = arith.constant 0 : index
    %23 = vector.load %arg11[%c0_10, %c0_11] : memref<64x1xf32, #tpu.memory_space<vmem>>, vector<64x1xf32>
    %24 = arith.mulf %19, %23 : vector<64x1xf32>
    %cst_12 = arith.constant dense<0.000000e+00> : vector<64xf32>
    %25 = vector.multi_reduction <add>, %22, %cst_12 [1] : vector<64x64xf32> to vector<64xf32>
    %26 = vector.shape_cast %25 : vector<64xf32> to vector<64x1xf32>
    %27 = arith.addf %24, %26 : vector<64x1xf32>
    %c0_13 = arith.constant 0 : index
    %c0_14 = arith.constant 0 : index
    %28 = vector.load %arg11[%c0_13, %c0_14] : memref<64x1xf32, #tpu.memory_space<vmem>>, vector<64x1xf32>
    tpu.vector_store %arg11[%c0_13, %c0_14], %27 {strides = array<i32>} : memref<64x1xf32, #tpu.memory_space<vmem>>, vector<64x1xf32>,
    %c0_15 = arith.constant 0 : index
    %c0_16 = arith.constant 0 : index
    %29 = vector.load %arg12[%c0_15, %c0_16] : memref<64x128xf32, #tpu.memory_space<vmem>>, vector<64x128xf32>
    %30 = vector.broadcast %19 : vector<64x1xf32> to vector<64x128xf32>
    %31 = arith.mulf %30, %29 : vector<64x128xf32>
    %32 = arith.truncf %22 : vector<64x64xf32> to vector<64x64xbf16>
    %cst_17 = arith.constant dense<0.000000e+00> : vector<64x128xf32>
    %33 = tpu.matmul %32, %12, %cst_17 {dimension_numbers = #tpu.dot_dimension_numbers<[1], [0], [0], [1], [0, 0, 1, 1], [], []>} : vector<64x64xbf16>, vector<64x128xbf16>, vector<64x128xf32> -> vector<64x128xf32>
    %34 = arith.addf %31, %33 : vector<64x128xf32>
    %c0_18 = arith.constant 0 : index
    %c0_19 = arith.constant 0 : index
    %35 = vector.load %arg12[%c0_18, %c0_19] : memref<64x128xf32, #tpu.memory_space<vmem>>, vector<64x128xf32>
    tpu.vector_store %arg12[%c0_18, %c0_19], %34 {strides = array<i32>} : memref<64x128xf32, #tpu.memory_space<vmem>>, vector<64x128xf32>,
    %c0_20 = arith.constant 0 : index
    %c0_21 = arith.constant 0 : index
    %36 = vector.load %arg10[%c0_20, %c0_21] : memref<64x1xf32, #tpu.memory_space<vmem>>, vector<64x1xf32>
    tpu.vector_store %arg10[%c0_20, %c0_21], %17 {strides = array<i32>} : memref<64x1xf32, #tpu.memory_space<vmem>>, vector<64x1xf32>,
    %c0_i32_22 = arith.constant 0 : i32
    %37 = arith.cmpi eq, %arg2, %c0_i32_22 : i32
    %38 = arith.extui %37 : i1 to i32
    %c0_i32_23 = arith.constant 0 : i32
    %39 = arith.cmpi ne, %38, %c0_i32_23 : i32
    scf.if %39 {
      %c0_24 = arith.constant 0 : index
      %c0_25 = arith.constant 0 : index
      %40 = vector.load %arg12[%c0_24, %c0_25] : memref<64x128xf32, #tpu.memory_space<vmem>>, vector<64x128xf32>
      %c0_26 = arith.constant 0 : index
      %c0_27 = arith.constant 0 : index
      %41 = vector.load %arg11[%c0_26, %c0_27] : memref<64x1xf32, #tpu.memory_space<vmem>>, vector<64x1xf32>
      %42 = tpu.reciprocal %41 : vector<64x1xf32> -> vector<64x1xf32>
      %43 = vector.broadcast %42 : vector<64x1xf32> to vector<64x128xf32>
      %44 = arith.mulf %40, %43 : vector<64x128xf32>
      %c0_28 = arith.constant 0 : index
      %c0_29 = arith.constant 0 : index
      %45 = vector.load %arg7[%c0_28, %c0_29] : memref<128x128xbf16, #tpu.memory_space<vmem>>, vector<128x128xbf16>
      %46 = arith.truncf %44 : vector<64x128xf32> to vector<64x128xbf16>
      %cst_30 = arith.constant dense<0.000000e+00> : vector<128x64xf32>
      %47 = tpu.matmul %45, %46, %cst_30 {dimension_numbers = #tpu.dot_dimension_numbers<[1], [1], [0], [0], [0, 0, 1, 0], [], []>} : vector<128x128xbf16>, vector<64x128xbf16>, vector<128x64xf32> -> vector<128x64xf32>
      %c0_31 = arith.constant 0 : index
      %c0_32 = arith.constant 0 : index
      %48 = vector.load %arg8[%c0_31, %c0_32] : memref<128x1xf32, #tpu.memory_space<vmem>>, vector<128x1xf32>
      %49 = vector.broadcast %48 : vector<128x1xf32> to vector<128x64xf32>
      %50 = arith.addf %47, %49 : vector<128x64xf32>
      %c0_33 = arith.constant 0 : index
      %c0_34 = arith.constant 0 : index
      %c0_35 = arith.constant 0 : index
      %51 = vector.load %arg3[%c0_33, %c0_34, %c0_35] : memref<1x128x64xf32, #tpu.memory_space<vmem>>, vector<1x128x64xf32>
      %52 = vector.shape_cast %51 : vector<1x128x64xf32> to vector<128x64xf32>
      %53 = arith.addf %52, %50 : vector<128x64xf32>
      %c0_36 = arith.constant 0 : index
      %c0_37 = arith.constant 0 : index
      %c0_38 = arith.constant 0 : index
      %54 = vector.load %arg9[%c0_36, %c0_37, %c0_38] : memref<1x128x64xf32, #tpu.memory_space<vmem>>, vector<1x128x64xf32>
      %55 = vector.shape_cast %54 : vector<1x128x64xf32> to vector<128x64xf32>
      %56 = vector.shape_cast %53 : vector<128x64xf32> to vector<1x128x64xf32>
      tpu.vector_store %arg9[%c0_36, %c0_37, %c0_38], %56 {strides = array<i32>} : memref<1x128x64xf32, #tpu.memory_space<vmem>>, vector<1x128x64xf32>,
    } else {
    }
    return
  }
  func.func @transform_0(%arg0: i32, %arg1: i32, %arg2: i32) -> (i32, i32, i32) {
    %c0_i32 = arith.constant 0 : i32
    %c0_i32_0 = arith.constant 0 : i32
    return %arg0, %c0_i32, %arg1 : i32, i32, i32
  }
  func.func @transform_1(%arg0: i32, %arg1: i32, %arg2: i32) -> (i32, i32, i32) {
    %c0_i32 = arith.constant 0 : i32
    %c0_i32_0 = arith.constant 0 : i32
    return %arg0, %arg1, %c0_i32 : i32, i32, i32
  }
  func.func @transform_2(%arg0: i32, %arg1: i32, %arg2: i32) -> (i32, i32, i32) {
    %c0_i32 = arith.constant 0 : i32
    %c0_i32_0 = arith.constant 0 : i32
    %c0_i32_1 = arith.constant 0 : i32
    return %arg0, %c0_i32, %c0_i32_0 : i32, i32, i32
  }
  func.func @transform_3(%arg0: i32, %arg1: i32, %arg2: i32) -> (i32, i32, i32) {
    %c0_i32 = arith.constant 0 : i32
    %c0_i32_0 = arith.constant 0 : i32
    %c0_i32_1 = arith.constant 0 : i32
    return %arg0, %c0_i32, %c0_i32_0 : i32, i32, i32
  }
  func.func @transform_4(%arg0: i32, %arg1: i32, %arg2: i32) -> (i32, i32) {
    %c0_i32 = arith.constant 0 : i32
    %c0_i32_0 = arith.constant 0 : i32
    %c0_i32_1 = arith.constant 0 : i32
    return %c0_i32, %c0_i32_0 : i32, i32
  }
  func.func @transform_5(%arg0: i32, %arg1: i32, %arg2: i32) -> (i32, i32) {
    %c0_i32 = arith.constant 0 : i32
    %c0_i32_0 = arith.constant 0 : i32
    %c0_i32_1 = arith.constant 0 : i32
    return %c0_i32, %c0_i32_0 : i32, i32
  }
  func.func @transform_6(%arg0: i32, %arg1: i32, %arg2: i32) -> (i32, i32, i32) {
    %c0_i32 = arith.constant 0 : i32
    %c0_i32_0 = arith.constant 0 : i32
    return %arg0, %c0_i32, %arg1 : i32, i32, i32
  }
}

module attributes {stable_mosaic.version = 11 : i64} {
  func.func @_qkv_kernel(%arg0: i32, %arg1: i32, %arg2: memref<1x128x64xf32, #tpu.memory_space<vmem>>, %arg3: memref<1x128x1xf32, #tpu.memory_space<vmem>>, %arg4: memref<1x128x1xf32, #tpu.memory_space<vmem>>, %arg5: memref<128x1xf32, #tpu.memory_space<vmem>>, %arg6: memref<128x1xf32, #tpu.memory_space<vmem>>, %arg7: memref<128x384xbf16, #tpu.memory_space<vmem>>, %arg8: memref<1x384xf32, #tpu.memory_space<vmem>>, %arg9: memref<1x64x128xbf16, #tpu.memory_space<vmem>>, %arg10: memref<1x64x128xbf16, #tpu.memory_space<vmem>>, %arg11: memref<1x64x128xbf16, #tpu.memory_space<vmem>>) attributes {dimension_semantics = [#tpu.dimension_semantics<parallel>, #tpu.dimension_semantics<parallel>], iteration_bounds = array<i64: 2, 1>, scalar_prefetch = 0 : i64, scratch_operands = 0 : i64, tpu.core_type = #tpu.core_type<tc>, window_params = [{transform_indices = @transform_0, window_bounds = array<i64: 1, 128, 64>}, {transform_indices = @transform_1, window_bounds = array<i64: 1, 128, 1>}, {transform_indices = @transform_2, window_bounds = array<i64: 1, 128, 1>}, {pipeline_mode = #tpu.pipeline_mode<synchronous>, transform_indices = @transform_3, window_bounds = array<i64: 128, 1>}, {pipeline_mode = #tpu.pipeline_mode<synchronous>, transform_indices = @transform_4, window_bounds = array<i64: 128, 1>}, {pipeline_mode = #tpu.pipeline_mode<synchronous>, transform_indices = @transform_5, window_bounds = array<i64: 128, 384>}, {pipeline_mode = #tpu.pipeline_mode<synchronous>, transform_indices = @transform_6, window_bounds = array<i64: 1, 384>}, {transform_indices = @transform_7, window_bounds = array<i64: 1, 64, 128>}, {transform_indices = @transform_8, window_bounds = array<i64: 1, 64, 128>}, {transform_indices = @transform_9, window_bounds = array<i64: 1, 64, 128>}]} {
    %c0 = arith.constant 0 : index
    %c0_0 = arith.constant 0 : index
    %c0_1 = arith.constant 0 : index
    %0 = vector.load %arg2[%c0, %c0_0, %c0_1] : memref<1x128x64xf32, #tpu.memory_space<vmem>>, vector<1x128x64xf32>
    %1 = vector.shape_cast %0 : vector<1x128x64xf32> to vector<128x64xf32>
    %c0_2 = arith.constant 0 : index
    %c0_3 = arith.constant 0 : index
    %c0_4 = arith.constant 0 : index
    %2 = vector.load %arg3[%c0_2, %c0_3, %c0_4] : memref<1x128x1xf32, #tpu.memory_space<vmem>>, vector<1x128x1xf32>
    %3 = vector.shape_cast %2 : vector<1x128x1xf32> to vector<128x1xf32>
    %4 = vector.broadcast %3 : vector<128x1xf32> to vector<128x64xf32>
    %5 = arith.subf %1, %4 : vector<128x64xf32>
    %c0_5 = arith.constant 0 : index
    %c0_6 = arith.constant 0 : index
    %c0_7 = arith.constant 0 : index
    %6 = vector.load %arg4[%c0_5, %c0_6, %c0_7] : memref<1x128x1xf32, #tpu.memory_space<vmem>>, vector<1x128x1xf32>
    %7 = vector.shape_cast %6 : vector<1x128x1xf32> to vector<128x1xf32>
    %c0_8 = arith.constant 0 : index
    %c0_9 = arith.constant 0 : index
    %8 = vector.load %arg5[%c0_8, %c0_9] : memref<128x1xf32, #tpu.memory_space<vmem>>, vector<128x1xf32>
    %9 = arith.mulf %7, %8 : vector<128x1xf32>
    %10 = vector.broadcast %9 : vector<128x1xf32> to vector<128x64xf32>
    %11 = arith.mulf %5, %10 : vector<128x64xf32>
    %c0_10 = arith.constant 0 : index
    %c0_11 = arith.constant 0 : index
    %12 = vector.load %arg6[%c0_10, %c0_11] : memref<128x1xf32, #tpu.memory_space<vmem>>, vector<128x1xf32>
    %13 = vector.broadcast %12 : vector<128x1xf32> to vector<128x64xf32>
    %14 = arith.addf %11, %13 : vector<128x64xf32>
    %15 = arith.truncf %14 : vector<128x64xf32> to vector<128x64xbf16>
    %c0_12 = arith.constant 0 : index
    %c0_13 = arith.constant 0 : index
    %16 = vector.load %arg7[%c0_12, %c0_13] : memref<128x384xbf16, #tpu.memory_space<vmem>>, vector<128x384xbf16>
    %cst = arith.constant dense<0.000000e+00> : vector<64x384xf32>
    %17 = tpu.matmul %15, %16, %cst {dimension_numbers = #tpu.dot_dimension_numbers<[0], [0], [1], [1], [0, 1, 1, 1], [], []>} : vector<128x64xbf16>, vector<128x384xbf16>, vector<64x384xf32> -> vector<64x384xf32>
    %c0_14 = arith.constant 0 : index
    %c0_15 = arith.constant 0 : index
    %18 = vector.load %arg8[%c0_14, %c0_15] : memref<1x384xf32, #tpu.memory_space<vmem>>, vector<1x384xf32>
    %19 = vector.broadcast %18 : vector<1x384xf32> to vector<64x384xf32>
    %20 = arith.addf %17, %19 : vector<64x384xf32>
    %21 = vector.extract_strided_slice %20 {offsets = [0, 0], sizes = [64, 128], strides = [1, 1]} : vector<64x384xf32> to vector<64x128xf32>
    %22 = arith.truncf %21 : vector<64x128xf32> to vector<64x128xbf16>
    %c0_16 = arith.constant 0 : index
    %c0_17 = arith.constant 0 : index
    %c0_18 = arith.constant 0 : index
    %23 = vector.load %arg9[%c0_16, %c0_17, %c0_18] : memref<1x64x128xbf16, #tpu.memory_space<vmem>>, vector<1x64x128xbf16>
    %24 = vector.shape_cast %23 : vector<1x64x128xbf16> to vector<64x128xbf16>
    %25 = vector.shape_cast %22 : vector<64x128xbf16> to vector<1x64x128xbf16>
    tpu.vector_store %arg9[%c0_16, %c0_17, %c0_18], %25 {strides = array<i32>} : memref<1x64x128xbf16, #tpu.memory_space<vmem>>, vector<1x64x128xbf16>,
    %26 = vector.extract_strided_slice %20 {offsets = [0, 128], sizes = [64, 128], strides = [1, 1]} : vector<64x384xf32> to vector<64x128xf32>
    %27 = arith.truncf %26 : vector<64x128xf32> to vector<64x128xbf16>
    %c0_19 = arith.constant 0 : index
    %c0_20 = arith.constant 0 : index
    %c0_21 = arith.constant 0 : index
    %28 = vector.load %arg10[%c0_19, %c0_20, %c0_21] : memref<1x64x128xbf16, #tpu.memory_space<vmem>>, vector<1x64x128xbf16>
    %29 = vector.shape_cast %28 : vector<1x64x128xbf16> to vector<64x128xbf16>
    %30 = vector.shape_cast %27 : vector<64x128xbf16> to vector<1x64x128xbf16>
    tpu.vector_store %arg10[%c0_19, %c0_20, %c0_21], %30 {strides = array<i32>} : memref<1x64x128xbf16, #tpu.memory_space<vmem>>, vector<1x64x128xbf16>,
    %31 = vector.extract_strided_slice %20 {offsets = [0, 256], sizes = [64, 128], strides = [1, 1]} : vector<64x384xf32> to vector<64x128xf32>
    %32 = arith.truncf %31 : vector<64x128xf32> to vector<64x128xbf16>
    %c0_22 = arith.constant 0 : index
    %c0_23 = arith.constant 0 : index
    %c0_24 = arith.constant 0 : index
    %33 = vector.load %arg11[%c0_22, %c0_23, %c0_24] : memref<1x64x128xbf16, #tpu.memory_space<vmem>>, vector<1x64x128xbf16>
    %34 = vector.shape_cast %33 : vector<1x64x128xbf16> to vector<64x128xbf16>
    %35 = vector.shape_cast %32 : vector<64x128xbf16> to vector<1x64x128xbf16>
    tpu.vector_store %arg11[%c0_22, %c0_23, %c0_24], %35 {strides = array<i32>} : memref<1x64x128xbf16, #tpu.memory_space<vmem>>, vector<1x64x128xbf16>,
    return
  }
  func.func @transform_0(%arg0: i32, %arg1: i32) -> (i32, i32, i32) {
    %c0_i32 = arith.constant 0 : i32
    %c0_i32_0 = arith.constant 0 : i32
    return %arg0, %c0_i32, %arg1 : i32, i32, i32
  }
  func.func @transform_1(%arg0: i32, %arg1: i32) -> (i32, i32, i32) {
    %c0_i32 = arith.constant 0 : i32
    %c0_i32_0 = arith.constant 0 : i32
    %c0_i32_1 = arith.constant 0 : i32
    return %arg0, %c0_i32, %c0_i32_0 : i32, i32, i32
  }
  func.func @transform_2(%arg0: i32, %arg1: i32) -> (i32, i32, i32) {
    %c0_i32 = arith.constant 0 : i32
    %c0_i32_0 = arith.constant 0 : i32
    %c0_i32_1 = arith.constant 0 : i32
    return %arg0, %c0_i32, %c0_i32_0 : i32, i32, i32
  }
  func.func @transform_3(%arg0: i32, %arg1: i32) -> (i32, i32) {
    %c0_i32 = arith.constant 0 : i32
    %c0_i32_0 = arith.constant 0 : i32
    %c0_i32_1 = arith.constant 0 : i32
    return %c0_i32, %c0_i32_0 : i32, i32
  }
  func.func @transform_4(%arg0: i32, %arg1: i32) -> (i32, i32) {
    %c0_i32 = arith.constant 0 : i32
    %c0_i32_0 = arith.constant 0 : i32
    %c0_i32_1 = arith.constant 0 : i32
    return %c0_i32, %c0_i32_0 : i32, i32
  }
  func.func @transform_5(%arg0: i32, %arg1: i32) -> (i32, i32) {
    %c0_i32 = arith.constant 0 : i32
    %c0_i32_0 = arith.constant 0 : i32
    %c0_i32_1 = arith.constant 0 : i32
    return %c0_i32, %c0_i32_0 : i32, i32
  }
  func.func @transform_6(%arg0: i32, %arg1: i32) -> (i32, i32) {
    %c0_i32 = arith.constant 0 : i32
    %c0_i32_0 = arith.constant 0 : i32
    %c0_i32_1 = arith.constant 0 : i32
    return %c0_i32, %c0_i32_0 : i32, i32
  }
  func.func @transform_7(%arg0: i32, %arg1: i32) -> (i32, i32, i32) {
    %c0_i32 = arith.constant 0 : i32
    %c0_i32_0 = arith.constant 0 : i32
    return %arg0, %arg1, %c0_i32 : i32, i32, i32
  }
  func.func @transform_8(%arg0: i32, %arg1: i32) -> (i32, i32, i32) {
    %c0_i32 = arith.constant 0 : i32
    %c0_i32_0 = arith.constant 0 : i32
    return %arg0, %arg1, %c0_i32 : i32, i32, i32
  }
  func.func @transform_9(%arg0: i32, %arg1: i32) -> (i32, i32, i32) {
    %c0_i32 = arith.constant 0 : i32
    %c0_i32_0 = arith.constant 0 : i32
    return %arg0, %arg1, %c0_i32 : i32, i32, i32
  }
}

</mosaic_0001>

<bundles_post_ra>
// kernel: attn_block_pallas.3
= control target key start
LH: loop header
LB: loop body
LE: loop exit
PB: predicated region body
PF: predicated region fallthrough
CT: control target
= control target key end

     0   :  { %s626_s9 = smov 0   ;;  %s628_s10 = smov 0   ;;  %s891_s0 = inlined_call_operand.vmem [shape: f32[2,128,64], index: 0, kind: input, shape index: {}]   ;;  %s892_s1 = inlined_call_operand.vmem [shape: f32[2,128,1], index: 1, kind: output, shape index: {0}]   ;;  %s893_s2 = inlined_call_operand.vmem [shape: f32[2,128,1], index: 2, kind: output, shape index: {1}]  }
   0x1   :  { %s630_s11 = smov 0  }
   0x2 LB: > { %s25_s12 = sadd.s32 1, %s604_s10  ;;  %p549_p0 = scmp.ge.s32.totalorder %s608_s11, 1  ;;  %s608_s11 = sphi %s630_s11, %s13_s11   ;;  %s604_s10 = sphi %s628_s10, %s895_s10   ;;  %s600_s9 = sphi %s626_s9, %s894_s9  }
   0x3   : > { %p27_p1 = scmp.ge.s32.totalorder %s25_s12, 2  ;;  %p132_p2 = scmp.lt.s32.totalorder %s608_s11, 3 }
   0x5   : > { %s897_s12 = smov (%p27_p1, %s25_s12), 0  ;;  %p133_p3 = pnand %p549_p0, %p132_p2 }
   0x6   : > { %p162_p4 = scmp.lt.s32.totalorder (!%p133_p3), %s600_s9, 1  ;;  %vm200_vm0 = vcmask (!%p133_p3), 7168   ;;  %vm249_vm1 = vcmask (!%p133_p3), 523264   ;;  %v610_v3 = vmov (!%p133_p3), 0.0  }
   0x7   : > { %136 = sbr.rel (%p133_p3) target bundleno = 224 (0xe0), region = 24 }
   0xe   : > { %s899_s9 = smov (!%p162_p4, %s600_s9), 1 }
   0xf   : > { %s558_s13 = sshll.u32 %s899_s9, 7 }
  0x10   : > { %s647_s16 = scalar_lea.vmem %s891_s0, %s558_s13  ;;  %s652_s19 = scalar_lea.vmem %s892_s1, %s558_s13 }
  0x11   : > { %s657_s22 = scalar_lea.vmem %s893_s2, %s558_s13  ;;  %v660_v0 = vld [vmem:[%s647_s16 + $0x10] sm:$0xff]  ;;  %v663_v1 = vld [vmem:[%s647_s16] sm:$0xff]  ;;  %v666_v2 = vld [vmem:[%s647_s16 + $0x18] sm:$0xff]  ;;  %203 = vst.msk [vmem:[%s652_s19 + $0x10] sm:$0xff] %vm200_vm0, %v610_v3 }
  0x12   : > { %201 = vst.msk [vmem:[%s652_s19] sm:$0xff] %vm200_vm0, %v610_v3  ;;  %202 = vst.msk [vmem:[%s652_s19 + $0x8] sm:$0xff] %vm200_vm0, %v610_v3  ;;  %v256_v4 = vsel %vm249_vm1, %v660_v0, 0.0  ;;  %v250_v5 = vsel %vm249_vm1, %v663_v1, 0.0  ;;  %v181_v6 = vld [vmem:[%s647_s16 + $0x8] sm:$0xff]  ;;  %v259_v7 = vsel %vm249_vm1, %v666_v2, 0.0  ;;  %v347_v31 = vmul.f32 %v663_v1, %v663_v1 }
  0x13   : > { %204 = vst.msk [vmem:[%s652_s19 + $0x18] sm:$0xff] %vm200_vm0, %v610_v3  ;;  %205 = vst.msk [vmem:[%s652_s19 + $0x20] sm:$0xff] %vm200_vm0, %v610_v3  ;;  %257 = vadd.xlane.f32.xlu1 %v256_v4  ;;  %251 = vadd.xlane.f32.xlu0 %v250_v5  ;;  %v253_v8 = vsel %vm249_vm1, %v181_v6, 0.0  ;;  %v185_v9 = vld [vmem:[%s647_s16 + $0x28] sm:$0xff]  ;;  %v184_v10 = vld [vmem:[%s647_s16 + $0x20] sm:$0xff]  ;;  %v348_v34 = vmul.f32 %v181_v6, %v181_v6  ;;  %v349_v35 = vmul.f32 %v660_v0, %v660_v0 }
  0x14   : > { %206 = vst.msk [vmem:[%s652_s19 + $0x28] sm:$0xff] %vm200_vm0, %v610_v3  ;;  %207 = vst.msk [vmem:[%s652_s19 + $0x30] sm:$0xff] %vm200_vm0, %v610_v3  ;;  %v265_v11 = vsel %vm249_vm1, %v185_v9, 0.0  ;;  %v262_v12 = vsel %vm249_vm1, %v184_v10, 0.0  ;;  %v187_v13 = vld [vmem:[%s647_s16 + $0x38] sm:$0xff]  ;;  %v186_v14 = vld [vmem:[%s647_s16 + $0x30] sm:$0xff]  ;;  %v350_v38 = vmul.f32 %v666_v2, %v666_v2  ;;  %v352_v41 = vmul.f32 %v185_v9, %v185_v9 }
  0x15   : > { %208 = vst.msk [vmem:[%s652_s19 + $0x38] sm:$0xff] %vm200_vm0, %v610_v3  ;;  %209 = vst.msk [vmem:[%s652_s19 + $0x40] sm:$0xff] %vm200_vm0, %v610_v3  ;;  %v271_v15 = vsel %vm249_vm1, %v187_v13, 0.0  ;;  %v268_v16 = vsel %vm249_vm1, %v186_v14, 0.0  ;;  %v189_v17 = vld [vmem:[%s647_s16 + $0x48] sm:$0xff]  ;;  %v188_v18 = vld [vmem:[%s647_s16 + $0x40] sm:$0xff]  ;;  %v351_v42 = vmul.f32 %v184_v10, %v184_v10  ;;  %v354_v45 = vmul.f32 %v187_v13, %v187_v13 }
  0x16   : > { %210 = vst.msk [vmem:[%s652_s19 + $0x48] sm:$0xff] %vm200_vm0, %v610_v3  ;;  %211 = vst.msk [vmem:[%s652_s19 + $0x50] sm:$0xff] %vm200_vm0, %v610_v3  ;;  %v277_v19 = vsel %vm249_vm1, %v189_v17, 0.0  ;;  %v274_v20 = vsel %vm249_vm1, %v188_v18, 0.0  ;;  %v191_v21 = vld [vmem:[%s647_s16 + $0x58] sm:$0xff]  ;;  %v190_v22 = vld [vmem:[%s647_s16 + $0x50] sm:$0xff]  ;;  %v353_v46 = vmul.f32 %v186_v14, %v186_v14  ;;  %v356_v49 = vmul.f32 %v189_v17, %v189_v17 }
  0x17   : > { %212 = vst.msk [vmem:[%s652_s19 + $0x58] sm:$0xff] %vm200_vm0, %v610_v3  ;;  %213 = vst.msk [vmem:[%s652_s19 + $0x60] sm:$0xff] %vm200_vm0, %v610_v3  ;;  %260 = vadd.xlane.f32.xlu1 %v259_v7  ;;  %254 = vadd.xlane.f32.xlu0 %v253_v8  ;;  %v283_v23 = vsel %vm249_vm1, %v191_v21, 0.0  ;;  %v280_v24 = vsel %vm249_vm1, %v190_v22, 0.0  ;;  %v193_v25 = vld [vmem:[%s647_s16 + $0x68] sm:$0xff]  ;;  %v192_v26 = vld [vmem:[%s647_s16 + $0x60] sm:$0xff]  ;;  %v355_v50 = vmul.f32 %v188_v18, %v188_v18 }
  0x18   : > { %214 = vst.msk [vmem:[%s652_s19 + $0x68] sm:$0xff] %vm200_vm0, %v610_v3  ;;  %215 = vst.msk [vmem:[%s652_s19 + $0x70] sm:$0xff] %vm200_vm0, %v610_v3  ;;  %v289_v27 = vsel %vm249_vm1, %v193_v25, 0.0  ;;  %v286_v28 = vsel %vm249_vm1, %v192_v26, 0.0  ;;  %v195_v29 = vld [vmem:[%s647_s16 + $0x78] sm:$0xff]  ;;  %v194_v30 = vld [vmem:[%s647_s16 + $0x70] sm:$0xff]  ;;  %v358_v53 = vmul.f32 %v191_v21, %v191_v21  ;;  %v357_v54 = vmul.f32 %v190_v22, %v190_v22 }
  0x19   : > { %216 = vst.msk [vmem:[%s652_s19 + $0x78] sm:$0xff] %vm200_vm0, %v610_v3  ;;  %217 = vst.msk [vmem:[%s657_s22] sm:$0xff] %vm200_vm0, %v610_v3  ;;  %v295_v32 = vsel %vm249_vm1, %v195_v29, 0.0  ;;  %v292_v33 = vsel %vm249_vm1, %v194_v30, 0.0  ;;  %v366_v36 = vsel %vm249_vm1, %v348_v34, 0.0  ;;  %v363_v37 = vsel %vm249_vm1, %v347_v31, 0.0 }
  0x1a   : > { %218 = vst.msk [vmem:[%s657_s22 + $0x8] sm:$0xff] %vm200_vm0, %v610_v3  ;;  %219 = vst.msk [vmem:[%s657_s22 + $0x10] sm:$0xff] %vm200_vm0, %v610_v3  ;;  %v372_v39 = vsel %vm249_vm1, %v350_v38, 0.0  ;;  %v369_v40 = vsel %vm249_vm1, %v349_v35, 0.0  ;;  %v378_v43 = vsel %vm249_vm1, %v352_v41, 0.0  ;;  %v375_v44 = vsel %vm249_vm1, %v351_v42, 0.0 }
  0x1b   : > { %220 = vst.msk [vmem:[%s657_s22 + $0x18] sm:$0xff] %vm200_vm0, %v610_v3  ;;  %221 = vst.msk [vmem:[%s657_s22 + $0x20] sm:$0xff] %vm200_vm0, %v610_v3  ;;  %266 = vadd.xlane.f32.xlu1 %v265_v11  ;;  %263 = vadd.xlane.f32.xlu0 %v262_v12  ;;  %v384_v47 = vsel %vm249_vm1, %v354_v45, 0.0  ;;  %v381_v48 = vsel %vm249_vm1, %v353_v46, 0.0  ;;  %v390_v51 = vsel %vm249_vm1, %v356_v49, 0.0  ;;  %v387_v52 = vsel %vm249_vm1, %v355_v50, 0.0 }
  0x1c   : > { %222 = vst.msk [vmem:[%s657_s22 + $0x28] sm:$0xff] %vm200_vm0, %v610_v3  ;;  %223 = vst.msk [vmem:[%s657_s22 + $0x30] sm:$0xff] %vm200_vm0, %v610_v3  ;;  %v396_v55 = vsel %vm249_vm1, %v358_v53, 0.0  ;;  %v393_v56 = vsel %vm249_vm1, %v357_v54, 0.0  ;;  %v360_v57 = vmul.f32 %v193_v25, %v193_v25  ;;  %v359_v58 = vmul.f32 %v192_v26, %v192_v26  ;;  %v235_v1 = vld [vmem:[%s652_s19 + $0x10] sm:$0xff]  ;;  %v233_v2 = vld [vmem:[%s652_s19] sm:$0xff] }
  0x1d   : > { %224 = vst.msk [vmem:[%s657_s22 + $0x38] sm:$0xff] %vm200_vm0, %v610_v3  ;;  %225 = vst.msk [vmem:[%s657_s22 + $0x40] sm:$0xff] %vm200_vm0, %v610_v3  ;;  %v362_v61 = vmul.f32 %v195_v29, %v195_v29  ;;  %v361_v62 = vmul.f32 %v194_v30, %v194_v30  ;;  %v236_v7 = vld [vmem:[%s652_s19 + $0x18] sm:$0xff]  ;;  %v234_v8 = vld [vmem:[%s652_s19 + $0x8] sm:$0xff] }
  0x1e   : > { %226 = vst.msk [vmem:[%s657_s22 + $0x48] sm:$0xff] %vm200_vm0, %v610_v3  ;;  %227 = vst.msk [vmem:[%s657_s22 + $0x50] sm:$0xff] %vm200_vm0, %v610_v3  ;;  %v402_v59 = vsel %vm249_vm1, %v360_v57, 0.0  ;;  %v399_v60 = vsel %vm249_vm1, %v359_v58, 0.0  ;;  %v238_v13 = vld [vmem:[%s652_s19 + $0x28] sm:$0xff]  ;;  %v237_v14 = vld [vmem:[%s652_s19 + $0x20] sm:$0xff] }
  0x1f   : > { %228 = vst.msk [vmem:[%s657_s22 + $0x58] sm:$0xff] %vm200_vm0, %v610_v3  ;;  %229 = vst.msk [vmem:[%s657_s22 + $0x60] sm:$0xff] %vm200_vm0, %v610_v3  ;;  %272 = vadd.xlane.f32.xlu1 %v271_v15  ;;  %269 = vadd.xlane.f32.xlu0 %v268_v16  ;;  %v408_v63 = vsel %vm249_vm1, %v362_v61, 0.0  ;;  %v405_v0 = vsel %vm249_vm1, %v361_v62, 0.0  ;;  %v242_v25 = vld [vmem:[%s652_s19 + $0x48] sm:$0xff]  ;;  %v241_v26 = vld [vmem:[%s652_s19 + $0x40] sm:$0xff] }
  0x20   : > { %230 = vst.msk [vmem:[%s657_s22 + $0x68] sm:$0xff] %vm200_vm0, %v610_v3  ;;  %231 = vst.msk [vmem:[%s657_s22 + $0x70] sm:$0xff] %vm200_vm0, %v610_v3  ;;  %v244_v31 = vld [vmem:[%s652_s19 + $0x58] sm:$0xff]  ;;  %v245_v38 = vld [vmem:[%s652_s19 + $0x60] sm:$0xff] }
  0x21   : > { %232 = vst.msk [vmem:[%s657_s22 + $0x78] sm:$0xff] %vm200_vm0, %v610_v3  ;;  %v332_v49 = vld [vmem:[%s657_s22 + $0x8] sm:$0xff]  ;;  %v331_v50 = vld [vmem:[%s657_s22] sm:$0xff] }
  0x22   : > { %v335_v62 = vld [vmem:[%s657_s22 + $0x20] sm:$0xff] }
  0x23   : > { %278 = vadd.xlane.f32.xlu1 %v277_v19  ;;  %275 = vadd.xlane.f32.xlu0 %v274_v20  ;;  %v240_v19 = vld [vmem:[%s652_s19 + $0x38] sm:$0xff]  ;;  %v239_v20 = vld [vmem:[%s652_s19 + $0x30] sm:$0xff]  ;;  %v336_v61 = vld [vmem:[%s657_s22 + $0x28] sm:$0xff] }
  0x27   : > { %284 = vadd.xlane.f32.xlu1 %v283_v23  ;;  %281 = vadd.xlane.f32.xlu0 %v280_v24 }
  0x2b   : > { %290 = vadd.xlane.f32.xlu1 %v289_v27  ;;  %287 = vadd.xlane.f32.xlu0 %v286_v28 }
  0x2f   : > { %296 = vadd.xlane.f32.xlu1 %v295_v32  ;;  %293 = vadd.xlane.f32.xlu0 %v292_v33  ;;  %v243_v32 = vld [vmem:[%s652_s19 + $0x50] sm:$0xff] }
  0x33   : > { %367 = vadd.xlane.f32.xlu1 %v366_v36  ;;  %364 = vadd.xlane.f32.xlu0 %v363_v37  ;;  %v246_v37 = vld [vmem:[%s652_s19 + $0x68] sm:$0xff] }
  0x37   : > { %373 = vadd.xlane.f32.xlu1 %v372_v39  ;;  %370 = vadd.xlane.f32.xlu0 %v369_v40 }
  0x3b   : > { %379 = vadd.xlane.f32.xlu1 %v378_v43  ;;  %376 = vadd.xlane.f32.xlu0 %v375_v44  ;;  %v248_v43 = vld [vmem:[%s652_s19 + $0x78] sm:$0xff]  ;;  %v247_v44 = vld [vmem:[%s652_s19 + $0x70] sm:$0xff] }
  0x3f   : > { %385 = vadd.xlane.f32.xlu1 %v384_v47  ;;  %382 = vadd.xlane.f32.xlu0 %v381_v48 }
  0x43   : > { %391 = vadd.xlane.f32.xlu1 %v390_v51  ;;  %388 = vadd.xlane.f32.xlu0 %v387_v52 }
  0x47   : > { %397 = vadd.xlane.f32.xlu1 %v396_v55  ;;  %394 = vadd.xlane.f32.xlu0 %v393_v56  ;;  %v334_v55 = vld [vmem:[%s657_s22 + $0x18] sm:$0xff]  ;;  %v333_v56 = vld [vmem:[%s657_s22 + $0x10] sm:$0xff] }
  0x4b   : > { %403 = vadd.xlane.f32.xlu1 %v402_v59  ;;  %400 = vadd.xlane.f32.xlu0 %v399_v60 }
  0x4f   : > { %409 = vadd.xlane.f32.xlu1 %v408_v63  ;;  %406 = vadd.xlane.f32.xlu0 %v405_v0 }
  0xa0   : > { %v258_v3 = vpop.xlane.xlu1 %257  ;;  %v252_v4 = vpop.xlane.xlu0 %251 }
  0xa1   : > { %v300_v5 = vadd.f32 %v258_v3, %v235_v1  ;;  %v298_v6 = vadd.f32 %v252_v4, %v233_v2  ;;  %v338_v3 = vld [vmem:[%s657_s22 + $0x38] sm:$0xff]  ;;  %v337_v4 = vld [vmem:[%s657_s22 + $0x30] sm:$0xff] }
  0xa3   : > { %317 = vst.msk [vmem:[%s652_s19 + $0x10] sm:$0xff] %vm200_vm0, %v300_v5  ;;  %315 = vst.msk [vmem:[%s652_s19] sm:$0xff] %vm200_vm0, %v298_v6 }
  0xa4   : > { %v261_v9 = vpop.xlane.xlu1 %260  ;;  %v255_v10 = vpop.xlane.xlu0 %254 }
  0xa5   : > { %v301_v11 = vadd.f32 %v261_v9, %v236_v7  ;;  %v299_v12 = vadd.f32 %v255_v10, %v234_v8  ;;  %v340_v9 = vld [vmem:[%s657_s22 + $0x48] sm:$0xff]  ;;  %v339_v10 = vld [vmem:[%s657_s22 + $0x40] sm:$0xff] }
  0xa7   : > { %318 = vst.msk [vmem:[%s652_s19 + $0x18] sm:$0xff] %vm200_vm0, %v301_v11  ;;  %316 = vst.msk [vmem:[%s652_s19 + $0x8] sm:$0xff] %vm200_vm0, %v299_v12 }
  0xa8   : > { %v267_v15 = vpop.xlane.xlu1 %266  ;;  %v264_v16 = vpop.xlane.xlu0 %263 }
  0xa9   : > { %v303_v17 = vadd.f32 %v267_v15, %v238_v13  ;;  %v302_v18 = vadd.f32 %v264_v16, %v237_v14  ;;  %v342_v15 = vld [vmem:[%s657_s22 + $0x58] sm:$0xff]  ;;  %v341_v16 = vld [vmem:[%s657_s22 + $0x50] sm:$0xff] }
  0xab   : > { %320 = vst.msk [vmem:[%s652_s19 + $0x28] sm:$0xff] %vm200_vm0, %v303_v17  ;;  %319 = vst.msk [vmem:[%s652_s19 + $0x20] sm:$0xff] %vm200_vm0, %v302_v18 }
  0xac   : > { %v273_v21 = vpop.xlane.xlu1 %272  ;;  %v270_v22 = vpop.xlane.xlu0 %269 }
  0xad   : > { %v305_v23 = vadd.f32 %v273_v21, %v240_v19  ;;  %v304_v24 = vadd.f32 %v270_v22, %v239_v20  ;;  %v344_v21 = vld [vmem:[%s657_s22 + $0x68] sm:$0xff]  ;;  %v343_v22 = vld [vmem:[%s657_s22 + $0x60] sm:$0xff] }
  0xaf   : > { %322 = vst.msk [vmem:[%s652_s19 + $0x38] sm:$0xff] %vm200_vm0, %v305_v23  ;;  %321 = vst.msk [vmem:[%s652_s19 + $0x30] sm:$0xff] %vm200_vm0, %v304_v24 }
  0xb0   : > { %v279_v27 = vpop.xlane.xlu1 %278  ;;  %v276_v28 = vpop.xlane.xlu0 %275 }
  0xb1   : > { %v307_v29 = vadd.f32 %v279_v27, %v242_v25  ;;  %v306_v30 = vadd.f32 %v276_v28, %v241_v26  ;;  %v346_v27 = vld [vmem:[%s657_s22 + $0x78] sm:$0xff]  ;;  %v345_v28 = vld [vmem:[%s657_s22 + $0x70] sm:$0xff] }
  0xb3   : > { %324 = vst.msk [vmem:[%s652_s19 + $0x48] sm:$0xff] %vm200_vm0, %v307_v29  ;;  %323 = vst.msk [vmem:[%s652_s19 + $0x40] sm:$0xff] %vm200_vm0, %v306_v30 }
  0xb4   : > { %v285_v33 = vpop.xlane.xlu1 %284  ;;  %v282_v34 = vpop.xlane.xlu0 %281 }
  0xb5   : > { %v309_v35 = vadd.f32 %v285_v33, %v244_v31  ;;  %v308_v36 = vadd.f32 %v282_v34, %v243_v32 }
  0xb7   : > { %326 = vst.msk [vmem:[%s652_s19 + $0x58] sm:$0xff] %vm200_vm0, %v309_v35  ;;  %325 = vst.msk [vmem:[%s652_s19 + $0x50] sm:$0xff] %vm200_vm0, %v308_v36 }
  0xb8   : > { %v291_v39 = vpop.xlane.xlu1 %290  ;;  %v288_v40 = vpop.xlane.xlu0 %287 }
  0xb9   : > { %v311_v41 = vadd.f32 %v291_v39, %v246_v37  ;;  %v310_v42 = vadd.f32 %v288_v40, %v245_v38 }
  0xbb   : > { %328 = vst.msk [vmem:[%s652_s19 + $0x68] sm:$0xff] %vm200_vm0, %v311_v41  ;;  %327 = vst.msk [vmem:[%s652_s19 + $0x60] sm:$0xff] %vm200_vm0, %v310_v42 }
  0xbc   : > { %v297_v45 = vpop.xlane.xlu1 %296  ;;  %v294_v46 = vpop.xlane.xlu0 %293 }
  0xbd   : > { %v313_v47 = vadd.f32 %v297_v45, %v248_v43  ;;  %v312_v48 = vadd.f32 %v294_v46, %v247_v44 }
  0xbf   : > { %330 = vst.msk [vmem:[%s652_s19 + $0x78] sm:$0xff] %vm200_vm0, %v313_v47  ;;  %329 = vst.msk [vmem:[%s652_s19 + $0x70] sm:$0xff] %vm200_vm0, %v312_v48 }
  0xc0   : > { %v368_v51 = vpop.xlane.xlu1 %367  ;;  %v365_v52 = vpop.xlane.xlu0 %364 }
  0xc1   : > { %v412_v53 = vadd.f32 %v368_v51, %v332_v49  ;;  %v411_v54 = vadd.f32 %v365_v52, %v331_v50 }
  0xc3   : > { %428 = vst.msk [vmem:[%s657_s22 + $0x8] sm:$0xff] %vm200_vm0, %v412_v53  ;;  %427 = vst.msk [vmem:[%s657_s22] sm:$0xff] %vm200_vm0, %v411_v54 }
  0xc4   : > { %v374_v57 = vpop.xlane.xlu1 %373  ;;  %v371_v58 = vpop.xlane.xlu0 %370 }
  0xc5   : > { %v414_v59 = vadd.f32 %v374_v57, %v334_v55  ;;  %v413_v60 = vadd.f32 %v371_v58, %v333_v56 }
  0xc7   : > { %430 = vst.msk [vmem:[%s657_s22 + $0x18] sm:$0xff] %vm200_vm0, %v414_v59  ;;  %429 = vst.msk [vmem:[%s657_s22 + $0x10] sm:$0xff] %vm200_vm0, %v413_v60 }
  0xc8   : > { %v380_v63 = vpop.xlane.xlu1 %379  ;;  %v377_v0 = vpop.xlane.xlu0 %376 }
  0xc9   : > { %v416_v1 = vadd.f32 %v380_v63, %v336_v61  ;;  %v415_v2 = vadd.f32 %v377_v0, %v335_v62 }
  0xcb   : > { %432 = vst.msk [vmem:[%s657_s22 + $0x28] sm:$0xff] %vm200_vm0, %v416_v1  ;;  %431 = vst.msk [vmem:[%s657_s22 + $0x20] sm:$0xff] %vm200_vm0, %v415_v2 }
  0xcc   : > { %v386_v5 = vpop.xlane.xlu1 %385  ;;  %v383_v6 = vpop.xlane.xlu0 %382 }
  0xcd   : > { %v418_v7 = vadd.f32 %v386_v5, %v338_v3  ;;  %v417_v8 = vadd.f32 %v383_v6, %v337_v4 }
  0xcf   : > { %434 = vst.msk [vmem:[%s657_s22 + $0x38] sm:$0xff] %vm200_vm0, %v418_v7  ;;  %433 = vst.msk [vmem:[%s657_s22 + $0x30] sm:$0xff] %vm200_vm0, %v417_v8 }
  0xd0   : > { %v392_v11 = vpop.xlane.xlu1 %391  ;;  %v389_v12 = vpop.xlane.xlu0 %388 }
  0xd1   : > { %v420_v13 = vadd.f32 %v392_v11, %v340_v9  ;;  %v419_v14 = vadd.f32 %v389_v12, %v339_v10 }
  0xd3   : > { %436 = vst.msk [vmem:[%s657_s22 + $0x48] sm:$0xff] %vm200_vm0, %v420_v13  ;;  %435 = vst.msk [vmem:[%s657_s22 + $0x40] sm:$0xff] %vm200_vm0, %v419_v14 }
  0xd4   : > { %v398_v17 = vpop.xlane.xlu1 %397  ;;  %v395_v18 = vpop.xlane.xlu0 %394 }
  0xd5   : > { %v422_v19 = vadd.f32 %v398_v17, %v342_v15  ;;  %v421_v20 = vadd.f32 %v395_v18, %v341_v16 }
  0xd7   : > { %438 = vst.msk [vmem:[%s657_s22 + $0x58] sm:$0xff] %vm200_vm0, %v422_v19  ;;  %437 = vst.msk [vmem:[%s657_s22 + $0x50] sm:$0xff] %vm200_vm0, %v421_v20 }
  0xd8   : > { %v404_v23 = vpop.xlane.xlu1 %403  ;;  %v401_v24 = vpop.xlane.xlu0 %400 }
  0xd9   : > { %v424_v25 = vadd.f32 %v404_v23, %v344_v21  ;;  %v423_v26 = vadd.f32 %v401_v24, %v343_v22 }
  0xdb   : > { %440 = vst.msk [vmem:[%s657_s22 + $0x68] sm:$0xff] %vm200_vm0, %v424_v25  ;;  %439 = vst.msk [vmem:[%s657_s22 + $0x60] sm:$0xff] %vm200_vm0, %v423_v26 }
  0xdc   : > { %v410_v29 = vpop.xlane.xlu1 %409  ;;  %v407_v30 = vpop.xlane.xlu0 %406 }
  0xdd   : > { %v426_v31 = vadd.f32 %v410_v29, %v346_v27  ;;  %v425_v32 = vadd.f32 %v407_v30, %v345_v28 }
  0xdf   : > { %442 = vst.msk [vmem:[%s657_s22 + $0x78] sm:$0xff] %vm200_vm0, %v426_v31  ;;  %441 = vst.msk [vmem:[%s657_s22 + $0x70] sm:$0xff] %vm200_vm0, %v425_v32 }
  0xe0 PF: > { %s13_s11 = sadd.s32 1, %s608_s11   ;;  %s894_s9 = smov %s604_s10 }
  0xe1   : > { %p10_p5 = scmp.ge.s32.totalorder %s13_s11, 4   ;;  %s895_s10 = smov %s897_s12 }
  0xe3   :  { %12 = sbr.rel (!%p10_p5) target bundleno = 2 (0x2), region = 70 }

// kernel: attn_block_pallas.5
= control target key start
LH: loop header
LB: loop body
LE: loop exit
PB: predicated region body
PF: predicated region fallthrough
CT: control target
= control target key end

     0   :  { %s1716_s21 = smov 0   ;;  %s1718_s22 = smov 0   ;;  %s2071_s0 = inlined_call_operand.vmem [shape: f32[2,128,64], index: 0, kind: input, shape index: {}]   ;;  %s2072_s1 = inlined_call_operand.vmem [shape: bf16[2,64,128], index: 1, kind: input, shape index: {}]   ;;  %s2073_s2 = inlined_call_operand.vmem [shape: bf16[2,64,128], index: 2, kind: input, shape index: {}]   ;;  %s2074_s3 = inlined_call_operand.vmem [shape: bf16[2,64,128], index: 3, kind: input, shape index: {}]   ;;  %s2075_s4 = inlined_call_operand.vmem [shape: bf16[128,128], index: 4, kind: input, shape index: {}]   ;;  %s2076_s5 = inlined_call_operand.vmem [shape: f32[128,1], index: 5, kind: input, shape index: {}]   ;;  %s2077_s6 = inlined_call_operand.vmem [shape: f32[2,128,64], index: 6, kind: output, shape index: {}]  }
   0x1   :  { %s1720_s23 = smov 0  }
   0x2 LB: > { %s35_s24 = sadd.s32 1, %s1672_s22  ;;  %p1431_p0 = scmp.ge.s32.totalorder %s1676_s23, 1  ;;  %s1676_s23 = sphi %s1720_s23, %s16_s23   ;;  %s1672_s22 = sphi %s1718_s22, %s2079_s22   ;;  %s1668_s21 = sphi %s1716_s21, %s2078_s21  }
   0x3   : > { %p37_p1 = scmp.ge.s32.totalorder %s35_s24, 2  ;;  %p275_p2 = scmp.lt.s32.totalorder %s1676_s23, 3 }
   0x5   : > { %s2081_s24 = smov (%p37_p1, %s35_s24), 0  ;;  %p276_p3 = pnand %p1431_p0, %p275_p2 }
   0x6   : > { %p330_p4 = scmp.lt.s32.totalorder (!%p276_p3), %s1668_s21, 1  ;;  %vm371_vm0 = vcmask (!%p276_p3), 7168   ;;  %v1678_v8 = vmov (!%p276_p3), -inf   ;;  %vm548_vm1 = vcmask (!%p276_p3), 523264   ;;  %v1679_v25 = vmov (!%p276_p3), 0  }
   0x7   : > { %279 = sbr.rel (%p276_p3) target bundleno = 1127 (0x467), region = 44  ;;  %374 = vst.msk [vmem:[#allocation2 + $0x10] sm:$0xff] (!%p276_p3), %vm371_vm0, %v1678_v8  ;;  %372 = vst.msk [vmem:[#allocation2] sm:$0xff] (!%p276_p3), %vm371_vm0, %v1678_v8  ;;  %1584 = vset.pattern.permute.xlu0 (!%p276_p3), %v1679_v25  ;;  %1585 = vset.pattern.permute.xlu1 (!%p276_p3), %v1679_v25  ;;  %v1680_v26 = vmov (!%p276_p3), 0.0  }
   0x8   : > { %373 = vst.msk [vmem:[#allocation2 + $0x8] sm:$0xff] (!%p276_p3), %vm371_vm0, %v1678_v8  ;;  %375 = vst.msk [vmem:[#allocation2 + $0x18] sm:$0xff] (!%p276_p3), %vm371_vm0, %v1678_v8 }
   0x9   : > { %376 = vst.msk [vmem:[#allocation2 + $0x20] sm:$0xff] (!%p276_p3), %vm371_vm0, %v1678_v8  ;;  %377 = vst.msk [vmem:[#allocation2 + $0x28] sm:$0xff] (!%p276_p3), %vm371_vm0, %v1678_v8 }
   0xa   : > { %378 = vst.msk [vmem:[#allocation2 + $0x30] sm:$0xff] (!%p276_p3), %vm371_vm0, %v1678_v8  ;;  %379 = vst.msk [vmem:[#allocation2 + $0x38] sm:$0xff] (!%p276_p3), %vm371_vm0, %v1678_v8 }
   0xb   : > { %380 = vst.msk [vmem:[#allocation3] sm:$0xff] (!%p276_p3), %vm371_vm0, %v1680_v26  ;;  %381 = vst.msk [vmem:[#allocation3 + $0x8] sm:$0xff] (!%p276_p3), %vm371_vm0, %v1680_v26 }
   0xc   : > { %382 = vst.msk [vmem:[#allocation3 + $0x10] sm:$0xff] (!%p276_p3), %vm371_vm0, %v1680_v26  ;;  %383 = vst.msk [vmem:[#allocation3 + $0x18] sm:$0xff] (!%p276_p3), %vm371_vm0, %v1680_v26 }
   0xd   : > { %384 = vst.msk [vmem:[#allocation3 + $0x20] sm:$0xff] (!%p276_p3), %vm371_vm0, %v1680_v26  ;;  %385 = vst.msk [vmem:[#allocation3 + $0x28] sm:$0xff] (!%p276_p3), %vm371_vm0, %v1680_v26 }
   0xe   : > { %s2083_s21 = smov (!%p330_p4, %s1668_s21), 1  ;;  %386 = vst.msk [vmem:[#allocation3 + $0x30] sm:$0xff] %vm371_vm0, %v1680_v26  ;;  %387 = vst.msk [vmem:[#allocation3 + $0x38] sm:$0xff] %vm371_vm0, %v1680_v26  ;;  %v1795_v27 = vld [vmem:[#allocation2 + $0x10] sm:$0xff]  ;;  %v1797_v28 = vld [vmem:[#allocation2] sm:$0xff] }
   0xf   : > { %s1737_s25 = sshll.u32 %s2083_s21, 5  ;;  %v1805_v33 = vld [vmem:[#allocation2 + $0x18] sm:$0xff]  ;;  %v1812_v35 = vld [vmem:[#allocation2 + $0x8] sm:$0xff]  ;;  %s1468_s19 = sshll.u32 %s2083_s21, 7 }
  0x10   : > { %s352_s28 = scalar_lea.vmem %s2073_s2, %s1737_s25  ;;  %s346_s7 = scalar_lea.vmem %s2072_s1, %s1737_s25  ;;  %v1829_v42 = vld [vmem:[#allocation2 + $0x20] sm:$0xff]  ;;  %v1836_v45 = vld [vmem:[#allocation2 + $0x28] sm:$0xff] }
  0x11   : > { %v1586_v0 = vld [vmem:[%s352_s28] sm:$0xff]   ;;  %v1587_v1 = vld [vmem:[%s352_s28 + $0x8] sm:$0xff]   ;;  %v1588_v3 = vld [vmem:[%s352_s28 + $0x10] sm:$0xff]   ;;  %s357_s10 = scalar_lea.vmem %s2074_s3, %s1737_s25  ;;  %s2007_s26 = scalar_lea.vmem %s2071_s0, %s1468_s19 }
  0x12   : > { %1501 = vmatprep.subr.bf16.mxu0 %v1586_v0  ;;  %v1590_v2 = vld [vmem:[%s346_s7] sm:$0xff]   ;;  %v1589_v4 = vld [vmem:[%s352_s28 + $0x18] sm:$0xff]   ;;  %v1591_v5 = vld [vmem:[%s346_s7 + $0x8] sm:$0xff]   ;;  %s2014_s21 = scalar_lea.vmem %s2077_s6, %s1468_s19 }
  0x13   : > { %1502 = vmatpush3.bf16.xpose.msra.mxu0 %v1586_v0  ;;  %1509 = vmatprep.mubr.bf16.mxu0 %v1590_v2  ;;  %v1592_v6 = vld [vmem:[%s346_s7 + $0x10] sm:$0xff]   ;;  %v1593_v7 = vld [vmem:[%s346_s7 + $0x18] sm:$0xff]   ;;  %v1594_v50 = vld [vmem:[%s357_s10] sm:$0xff]  }
  0x14   : > { %1503 = vmatprep.subr.bf16.mxu0 %v1587_v1  ;;  %v1841_v47 = vld [vmem:[#allocation2 + $0x30] sm:$0xff]  ;;  %v1847_v49 = vld [vmem:[#allocation2 + $0x38] sm:$0xff]  ;;  %v1595_v57 = vld [vmem:[%s357_s10 + $0x8] sm:$0xff]  }
  0x15   : > { %v1596_v61 = vld [vmem:[%s357_s10 + $0x10] sm:$0xff]   ;;  %v1597_v62 = vld [vmem:[%s357_s10 + $0x18] sm:$0xff]  }
  0x1b   : > { %1504 = vmatpush3.bf16.xpose.msra.mxu0 %v1587_v1 }
  0x1c   : > { %1505 = vmatprep.subr.bf16.mxu0 %v1588_v3 }
  0x23   : > { %1506 = vmatpush3.bf16.xpose.msra.mxu0 %v1588_v3 }
  0x24   : > { %1507 = vmatprep.subr.bf16.mxu0 %v1589_v4 }
  0x2b   : > { %1508 = vmatpush3.bf16.xpose.msra.mxu0 %v1589_v4 }
  0x2c   : > { %1517 = vmatprep.subr.bf16.mxu0 %v1594_v50 }
  0x32   : > { %1510 = vmatmul.mubr.bf16.vlgmr.msra.gmra.mrb[0].mxu0 %v1591_v5 }
  0x33   : > { %1513 = vmatprep.mubr.bf16.mxu0 %v1592_v6  ;;  %1518 = vmatpush3.bf16.msra.mxu0 %v1594_v50 }
  0x34   : > { %1519 = vmatprep.subr.bf16.mxu0 %v1595_v57 }
  0x37   : > { %1520 = vmatpush3.bf16.msra.mxu0 %v1595_v57 }
  0x38   : > { %1521 = vmatprep.subr.bf16.mxu0 %v1596_v61 }
  0x3a   : > { %1514 = vmatmul.mubr.bf16.gmra.mrb[4].mxu0 %v1593_v7 }
  0x3b   : > { %1522 = vmatpush3.bf16.msra.mxu0 %v1596_v61 }
  0x3c   : > { %1523 = vmatprep.subr.bf16.mxu0 %v1597_v62 }
  0x3f   : > { %1524 = vmatpush3.bf16.msra.mxu0 %v1597_v62 }
 0x105   : > { %v1755_v9 = vpop.f32.mrb[0].mxu0 }
 0x106   : > { %v1757_v10 = vpop.f32.mrb[1].mxu0  ;;  %v555_v11 = vsel %vm548_vm1, %v1755_v9, -inf }
 0x107   : > { %556 = vmax.xlane.f32.xlu1 %v555_v11  ;;  %v1761_v12 = vpop.f32.mrb[2].mxu0  ;;  %v549_v13 = vsel %vm548_vm1, %v1757_v10, -inf }
 0x108   : > { %550 = vmax.xlane.f32.xlu0 %v549_v13  ;;  %v1765_v14 = vpop.f32.mrb[3].mxu0  ;;  %v558_v15 = vsel %vm548_vm1, %v1761_v12, -inf }
 0x109   : > { %v552_v16 = vsel %vm548_vm1, %v1765_v14, -inf }
 0x10b   : > { %559 = vmax.xlane.f32.xlu1 %v558_v15 }
 0x10c   : > { %553 = vmax.xlane.f32.xlu0 %v552_v16 }
 0x10d   : > { %v1771_v17 = vpop.f32.mrb[4].mxu0 }
 0x10e   : > { %v1773_v18 = vpop.f32.mrb[5].mxu0  ;;  %v567_v23 = vsel %vm548_vm1, %v1771_v17, -inf }
 0x10f   : > { %v1775_v19 = vpop.f32.mrb[6].mxu0  ;;  %v561_v20 = vsel %vm548_vm1, %v1773_v18, -inf }
 0x110   : > { %562 = vmax.xlane.f32.xlu0 %v561_v20  ;;  %v1779_v21 = vpop.f32.mrb[7].mxu0  ;;  %v570_v24 = vsel %vm548_vm1, %v1775_v19, -inf }
 0x111   : > { %v564_v22 = vsel %vm548_vm1, %v1779_v21, -inf }
 0x112   : > { %565 = vmax.xlane.f32.xlu1 %v564_v22 }
 0x114   : > { %568 = vmax.xlane.f32.xlu0 %v567_v23 }
 0x116   : > { %571 = vmax.xlane.f32.xlu1 %v570_v24 }
 0x194   : > { %v557_v29 = vpop.xlane.xlu1 %556 }
 0x195   : > { %v1800_v30 = vmax.f32 %v1795_v27, %v557_v29  ;;  %v551_v31 = vpop.xlane.xlu0 %550 }
 0x196   : > { %v1803_v32 = vmax.f32 %v1797_v28, %v551_v31 }
 0x197   : > { %v583_v34 = vsub.f32 %v1795_v27, %v1800_v30  ;;  %905 = vst.msk [vmem:[#allocation2 + $0x10] sm:$0xff] %vm371_vm0, %v1800_v30  ;;  %617 = vperm.xlu1 %1585, %v1800_v30  }
 0x198   : > { %v581_v36 = vsub.f32 %v1797_v28, %v1803_v32  ;;  %903 = vst.msk [vmem:[#allocation2] sm:$0xff] %vm371_vm0, %v1803_v32  ;;  %v560_v37 = vpop.xlane.xlu1 %559  ;;  %607 = vperm.xlu0 %1584, %v1803_v32  }
 0x199   : > { %v1820_v38 = vmax.f32 %v1805_v33, %v560_v37  ;;  %v554_v39 = vpop.xlane.xlu0 %553 }
 0x19a   : > { %v1823_v40 = vmax.f32 %v1812_v35, %v554_v39 }
 0x19b   : > { %v584_v41 = vsub.f32 %v1805_v33, %v1820_v38  ;;  %906 = vst.msk [vmem:[#allocation2 + $0x18] sm:$0xff] %vm371_vm0, %v1820_v38 }
 0x19c   : > { %v582_v43 = vsub.f32 %v1812_v35, %v1823_v40  ;;  %904 = vst.msk [vmem:[#allocation2 + $0x8] sm:$0xff] %vm371_vm0, %v1823_v40  ;;  %612 = vperm.xlu1 %1585, %v1823_v40   ;;  %v669_v35 = vld [vmem:[#allocation3] sm:$0xff]  ;;  %v670_v40 = vld [vmem:[#allocation3 + $0x8] sm:$0xff] }
 0x19d   : > { %v563_v44 = vpop.xlane.xlu0 %562 }
 0x19e   : > { %v1839_v46 = vmax.f32 %v1829_v42, %v563_v44 }
 0x19f   : > { %v566_v48 = vpop.xlane.xlu1 %565 }
 0x1a0   : > { %v585_v51 = vsub.f32 %v1829_v42, %v1839_v46  ;;  %907 = vst.msk [vmem:[#allocation2 + $0x20] sm:$0xff] %vm371_vm0, %v1839_v46  ;;  %v1854_v52 = vmax.f32 %v1836_v45, %v566_v48  ;;  %622 = vperm.xlu1 %1585, %v1820_v38   ;;  %v671_v42 = vld [vmem:[#allocation3 + $0x10] sm:$0xff] }
 0x1a1   : > { %v569_v53 = vpop.xlane.xlu0 %568 }
 0x1a2   : > { %v586_v54 = vsub.f32 %v1836_v45, %v1854_v52  ;;  %908 = vst.msk [vmem:[#allocation2 + $0x28] sm:$0xff] %vm371_vm0, %v1854_v52  ;;  %v1862_v55 = vmax.f32 %v1841_v47, %v569_v53  ;;  %v597_v28 = vmul.f32 1.442695, %v585_v51 }
 0x1a3   : > { %v572_v56 = vpop.xlane.xlu1 %571 }
 0x1a4   : > { %v587_v58 = vsub.f32 %v1841_v47, %v1862_v55  ;;  %909 = vst.msk [vmem:[#allocation2 + $0x30] sm:$0xff] %vm371_vm0, %v1862_v55  ;;  %v1869_v59 = vmax.f32 %v1847_v49, %v572_v56  ;;  %637 = vperm.xlu1 %1585, %v1862_v55  }
 0x1a6   : > { %v588_v60 = vsub.f32 %v1847_v49, %v1869_v59  ;;  %910 = vst.msk [vmem:[#allocation2 + $0x38] sm:$0xff] %vm371_vm0, %v1869_v59  ;;  %v601_v30 = vmul.f32 1.442695, %v587_v58 }
 0x1a8   : > { %627 = vperm.xlu1 %1585, %v1839_v46   ;;  %v672_v46 = vld [vmem:[#allocation3 + $0x18] sm:$0xff]  ;;  %v603_v45 = vmul.f32 1.442695, %v588_v60 }
 0x1ac   : > { %632 = vperm.xlu1 %1585, %v1854_v52  }
 0x1b0   : > { %642 = vperm.xlu1 %1585, %v1869_v59  }
 0x216   : > { %v618_v63 = vpop.permute.xlu1 %617 }
 0x217   : > { %v608_v0 = vpop.permute.xlu0 %607  ;;  %v647_v2 = vsub.f32 %v1755_v9, %v618_v63 }
 0x218   : > { %v645_v1 = vsub.f32 %v1757_v10, %v608_v0 }
 0x219   : > { %v657_v6 = vmul.f32 1.442695, %v647_v2 }
 0x21a   : > { %v653_v3 = vmul.f32 1.442695, %v645_v1 }
 0x21b   : > { %v613_v4 = vpop.permute.xlu1 %612 }
 0x21c   : > { %1606 = vpow2.f32 %v653_v3  ;;  %v646_v5 = vsub.f32 %v1765_v14, %v613_v4  ;;  %v591_v3 = vmul.f32 1.442695, %v582_v43  ;;  %v589_v4 = vmul.f32 1.442695, %v581_v36 }
 0x21d   : > { %v599_v43 = vmul.f32 1.442695, %v586_v54 }
 0x21e   : > { %v655_v7 = vmul.f32 1.442695, %v646_v5 }
 0x21f   : > { %v623_v8 = vpop.permute.xlu1 %622 }
 0x220   : > { %1608 = vpow2.f32 %v655_v7  ;;  %v648_v11 = vsub.f32 %v1761_v12, %v623_v8  ;;  %v593_v7 = vmul.f32 1.442695, %v583_v34  ;;  %v595_v8 = vmul.f32 1.442695, %v584_v41 }
 0x221   : > { %1610 = vpow2.f32 %v657_v6 }
 0x222   : > { %v659_v13 = vmul.f32 1.442695, %v648_v11 }
 0x223   : > { %v638_v15 = vpop.permute.xlu1 %637 }
 0x224   : > { %1612 = vpow2.f32 %v659_v13  ;;  %v651_v10 = vsub.f32 %v1771_v17, %v638_v15 }
 0x226   : > { %v1607_v16 = vpop.eup %1606  ;;  %v665_v23 = vmul.f32 1.442695, %v651_v10 }
 0x227   : > { %v628_v20 = vpop.permute.xlu1 %627  ;;  %v685_v9 = vsel %vm548_vm1, %v1607_v16, 0.0 }
 0x228   : > { %v649_v22 = vsub.f32 %v1773_v18, %v628_v20  ;;  %686 = vadd.xlane.f32.xlu1 %v685_v9  ;;  %v675_v9 = vld [vmem:[#allocation3 + $0x30] sm:$0xff] }
 0x22a   : > { %v1609_v14 = vpop.eup %1608  ;;  %v661_v24 = vmul.f32 1.442695, %v649_v22  ;;  %v674_v22 = vld [vmem:[#allocation3 + $0x28] sm:$0xff] }
 0x22b   : > { %v633_v25 = vpop.permute.xlu1 %632  ;;  %v688_v26 = vsel %vm548_vm1, %v1609_v14, 0.0  ;;  %v782_v12 = vpack.c.bf16 %v1609_v14, %v1607_v16  ;;  %v1611_v29 = vpop.eup %1610  ;;  %v673_v16 = vld [vmem:[#allocation3 + $0x20] sm:$0xff] }
 0x22c   : > { %1614 = vpow2.f32 %v661_v24  ;;  %v650_v31 = vsub.f32 %v1779_v21, %v633_v25  ;;  %689 = vadd.xlane.f32.xlu0 %v688_v26  ;;  %v691_v44 = vsel %vm548_vm1, %v1611_v29, 0.0 }
 0x22d   : > { %1525 = vmatprep.mubr.msk.bf16.mxu0 %vm548_vm1, %v782_v12  ;;  %1616 = vpow2.f32 %v665_v23 }
 0x22e   : > { %v1613_v17 = vpop.eup %1612  ;;  %v663_v37 = vmul.f32 1.442695, %v650_v31  ;;  %v676_v31 = vld [vmem:[#allocation3 + $0x38] sm:$0xff] }
 0x22f   : > { %v783_v39 = vpack.c.bf16 %v1613_v17, %v1611_v29  ;;  %v643_v18 = vpop.permute.xlu1 %642  ;;  %v694_v48 = vsel %vm548_vm1, %v1613_v17, 0.0 }
 0x230   : > { %1618 = vpow2.f32 %v663_v37  ;;  %v652_v50 = vsub.f32 %v1775_v19, %v643_v18  ;;  %692 = vadd.xlane.f32.xlu0 %v691_v44  ;;  %695 = vadd.xlane.f32.xlu1 %v694_v48 }
 0x231   : > { %1526 = vmatmul.mubr.msk.bf16.vlgmr.msra.gmra.mrb[8].mxu0 %vm548_vm1, %v783_v39 }
 0x232   : > { %v667_v21 = vmul.f32 1.442695, %v652_v50 }
 0x234   : > { %1620 = vpow2.f32 %v667_v21 }
 0x235   : > { %1622 = vpow2.f32 %v591_v3 }
 0x236   : > { %v1615_v53 = vpop.eup %1614  ;;  %1624 = vpow2.f32 %v589_v4  ;;  %v1008_v4 = vld [vmem:[%s2076_s5 + $0x10] sm:$0xff] }
 0x237   : > { %v697_v56 = vsel %vm548_vm1, %v1615_v53, 0.0  ;;  %v1617_v57 = vpop.eup %1616  ;;  %1626 = vpow2.f32 %v593_v7  ;;  %v1009_v7 = vld [vmem:[%s2076_s5 + $0x18] sm:$0xff] }
 0x238   : > { %698 = vadd.xlane.f32.xlu0 %v697_v56  ;;  %v703_v62 = vsel %vm548_vm1, %v1617_v57, 0.0  ;;  %1628 = vpow2.f32 %v595_v8  ;;  %v1598_v8 = vld [vmem:[%s2075_s4] sm:$0xff]  }
 0x239   : > { %1630 = vpow2.f32 %v597_v28  ;;  %v1011_v28 = vld [vmem:[%s2076_s5 + $0x28] sm:$0xff]  ;;  %1541 = vmatprep.mubr.bf16.mxu1 %v1598_v8 }
 0x23a   : > { %v1619_v61 = vpop.eup %1618  ;;  %1632 = vpow2.f32 %v599_v43  ;;  %v1015_v43 = vld [vmem:[%s2076_s5 + $0x48] sm:$0xff] }
 0x23b   : > { %v700_v63 = vsel %vm548_vm1, %v1619_v61, 0.0  ;;  %v784_v0 = vpack.c.bf16 %v1619_v61, %v1615_v53  ;;  %1634 = vpow2.f32 %v601_v30  ;;  %v1017_v30 = vld [vmem:[%s2076_s5 + $0x58] sm:$0xff]  ;;  %v1599_v8 = vld [vmem:[%s2075_s4 + $0x8] sm:$0xff]  }
 0x23c   : > { %704 = vadd.xlane.f32.xlu0 %v703_v62  ;;  %701 = vadd.xlane.f32.xlu1 %v700_v63  ;;  %1636 = vpow2.f32 %v603_v45 }
 0x23d   : > { %1529 = vmatprep.mubr.msk.bf16.mxu0 %vm548_vm1, %v784_v0 }
 0x23e   : > { %v1621_v19 = vpop.eup %1620 }
 0x23f   : > { %v706_v1 = vsel %vm548_vm1, %v1621_v19, 0.0  ;;  %v785_v2 = vpack.c.bf16 %v1621_v19, %v1617_v57  ;;  %v1623_v5 = vpop.eup %1622 }
 0x240   : > { %707 = vadd.xlane.f32.xlu1 %v706_v1  ;;  %v1625_v6 = vpop.eup %1624  ;;  %v678_v34 = vmul.f32 %v1623_v5, %v670_v40  ;;  %v1016_v40 = vld [vmem:[%s2076_s5 + $0x50] sm:$0xff] }
 0x241   : > { %1530 = vmatmul.mubr.msk.bf16.gmra.mrb[12].mxu0 %vm548_vm1, %v785_v2  ;;  %v677_v32 = vmul.f32 %v1625_v6, %v669_v35  ;;  %v1627_v33 = vpop.eup %1626  ;;  %v1006_v2 = vld [vmem:[%s2076_s5] sm:$0xff]  ;;  %v1012_v35 = vld [vmem:[%s2076_s5 + $0x30] sm:$0xff] }
 0x242   : > { %v1629_v38 = vpop.eup %1628  ;;  %v679_v52 = vmul.f32 %v1627_v33, %v671_v42 }
 0x243   : > { %v680_v47 = vmul.f32 %v1629_v38, %v672_v46  ;;  %v1631_v15 = vpop.eup %1630 }
 0x244   : > { %v1633_v49 = vpop.eup %1632  ;;  %v681_v59 = vmul.f32 %v1631_v15, %v673_v16 }
 0x245   : > { %v1635_v60 = vpop.eup %1634  ;;  %v682_v25 = vmul.f32 %v1633_v49, %v674_v22 }
 0x246   : > { %v683_v24 = vmul.f32 %v1635_v60, %v675_v9  ;;  %v1637_v26 = vpop.eup %1636 }
 0x247   : > { %v684_v44 = vmul.f32 %v1637_v26, %v676_v31 }
 0x251   : > { %741 = vperm.xlu1 %1585, %v1623_v5   ;;  %v1007_v5 = vld [vmem:[%s2076_s5 + $0x8] sm:$0xff] }
 0x252   : > { %736 = vperm.xlu0 %1584, %v1625_v6   ;;  %v1010_v6 = vld [vmem:[%s2076_s5 + $0x20] sm:$0xff] }
 0x2b5   : > { %v687_v36 = vpop.xlane.xlu1 %686 }
 0x2b6   : > { %v709_v27 = vadd.f32 %v687_v36, %v677_v32  ;;  %v1014_v32 = vld [vmem:[%s2076_s5 + $0x40] sm:$0xff]  ;;  %v1013_v36 = vld [vmem:[%s2076_s5 + $0x38] sm:$0xff] }
 0x2b8   : > { %718 = vst.msk [vmem:[#allocation3] sm:$0xff] %vm371_vm0, %v709_v27  ;;  %v1018_v27 = vld [vmem:[%s2076_s5 + $0x60] sm:$0xff] }
 0x2b9   : > { %v690_v41 = vpop.xlane.xlu0 %689 }
 0x2ba   : > { %v710_v51 = vadd.f32 %v690_v41, %v678_v34  ;;  %v1019_v34 = vld [vmem:[%s2076_s5 + $0x68] sm:$0xff]  ;;  %v1021_v41 = vld [vmem:[%s2076_s5 + $0x78] sm:$0xff] }
 0x2bc   : > { %719 = vst.msk [vmem:[#allocation3 + $0x8] sm:$0xff] %vm371_vm0, %v710_v51 }
 0x2bd   : > { %v693_v54 = vpop.xlane.xlu0 %692  ;;  %v696_v55 = vpop.xlane.xlu1 %695 }
 0x2be   : > { %v711_v58 = vadd.f32 %v693_v54, %v679_v52  ;;  %v712_v11 = vadd.f32 %v696_v55, %v680_v47 }
 0x2bf   : > { %v922_v13 = vld [vmem:[#allocation3] sm:$0xff] }
 0x2c0   : > { %720 = vst.msk [vmem:[#allocation3 + $0x10] sm:$0xff] %vm371_vm0, %v711_v58  ;;  %721 = vst.msk [vmem:[#allocation3 + $0x18] sm:$0xff] %vm371_vm0, %v712_v11  ;;  %1638 = vrcp.f32 %v922_v13 }
 0x2c3   : > { %v923_v10 = vld [vmem:[#allocation3 + $0x8] sm:$0xff] }
 0x2c4   : > { %1640 = vrcp.f32 %v923_v10 }
 0x2c5   : > { %v699_v20 = vpop.xlane.xlu0 %698 }
 0x2c6   : > { %v713_v14 = vadd.f32 %v699_v20, %v681_v59 }
 0x2c7   : > { %v924_v23 = vld [vmem:[#allocation3 + $0x10] sm:$0xff]  ;;  %v925_v17 = vld [vmem:[#allocation3 + $0x18] sm:$0xff] }
 0x2c8   : > { %722 = vst.msk [vmem:[#allocation3 + $0x20] sm:$0xff] %vm371_vm0, %v713_v14  ;;  %1642 = vrcp.f32 %v924_v23 }
 0x2c9   : > { %v705_v12 = vpop.xlane.xlu0 %704  ;;  %v702_v29 = vpop.xlane.xlu1 %701  ;;  %1644 = vrcp.f32 %v925_v17 }
 0x2ca   : > { %v1639_v37 = vpop.eup %1638  ;;  %v715_v39 = vadd.f32 %v705_v12, %v683_v24  ;;  %v714_v18 = vadd.f32 %v702_v29, %v682_v25 }
 0x2cb   : > { %940 = vperm.xlu1 %1585, %v1639_v37  }
 0x2cc   : > { %724 = vst.msk [vmem:[#allocation3 + $0x30] sm:$0xff] %vm371_vm0, %v715_v39  ;;  %723 = vst.msk [vmem:[#allocation3 + $0x28] sm:$0xff] %vm371_vm0, %v714_v18 }
 0x2cd   : > { %v708_v48 = vpop.xlane.xlu1 %707 }
 0x2ce   : > { %v1641_v50 = vpop.eup %1640  ;;  %v716_v21 = vadd.f32 %v708_v48, %v684_v44 }
 0x2cf   : > { %945 = vperm.xlu0 %1584, %v1641_v50   ;;  %746 = vperm.xlu1 %1585, %v1627_v33   ;;  %v926_v53 = vld [vmem:[#allocation3 + $0x20] sm:$0xff]  ;;  %v1020_v33 = vld [vmem:[%s2076_s5 + $0x70] sm:$0xff] }
 0x2d0   : > { %725 = vst.msk [vmem:[#allocation3 + $0x38] sm:$0xff] %vm371_vm0, %v716_v21  ;;  %1646 = vrcp.f32 %v926_v53 }
 0x2d1   : > { %v742_v55 = vpop.permute.xlu1 %741  ;;  %v737_v58 = vpop.permute.xlu0 %736 }
 0x2d2   : > { %v1643_v56 = vpop.eup %1642  ;;  %v774_v13 = vmul.f32 0.0, %v737_v58 }
 0x2d3   : > { %751 = vperm.xlu0 %1584, %v1629_v38   ;;  %950 = vperm.xlu1 %1585, %v1643_v56   ;;  %v927_v57 = vld [vmem:[#allocation3 + $0x28] sm:$0xff]  ;;  %v928_v61 = vld [vmem:[#allocation3 + $0x30] sm:$0xff]  ;;  %v1645_v62 = vpop.eup %1644 }
 0x2d4   : > { %1648 = vrcp.f32 %v927_v57 }
 0x2d5   : > { %1650 = vrcp.f32 %v928_v61 }
 0x2d7   : > { %756 = vperm.xlu1 %1585, %v1631_v15   ;;  %955 = vperm.xlu0 %1584, %v1645_v62   ;;  %v929_v63 = vld [vmem:[#allocation3 + $0x38] sm:$0xff]  ;;  %v775_v15 = vmul.f32 0.0, %v742_v55 }
 0x2d8   : > { %1652 = vrcp.f32 %v929_v63 }
 0x2da   : > { %v1647_v0 = vpop.eup %1646 }
 0x2db   : > { %960 = vperm.xlu1 %1585, %v1647_v0   ;;  %761 = vperm.xlu0 %1584, %v1633_v49  }
 0x2de   : > { %v1649_v19 = vpop.eup %1648 }
 0x2df   : > { %766 = vperm.xlu1 %1585, %v1635_v60   ;;  %965 = vperm.xlu0 %1584, %v1649_v19   ;;  %v1651_v1 = vpop.eup %1650 }
 0x2e2   : > { %v1653_v3 = vpop.eup %1652 }
 0x2e3   : > { %970 = vperm.xlu1 %1585, %v1651_v1   ;;  %771 = vperm.xlu0 %1584, %v1637_v26  }
 0x2e7   : > { %1024 = vperm.xlu1 %1585, %v1006_v2   ;;  %975 = vperm.xlu0 %1584, %v1653_v3  }
 0x2eb   : > { %1034 = vperm.xlu1 %1585, %v1008_v4   ;;  %1029 = vperm.xlu0 %1584, %v1007_v5  }
 0x2ef   : > { %1044 = vperm.xlu1 %1585, %v1010_v6   ;;  %1039 = vperm.xlu0 %1584, %v1009_v7  }
 0x2f3   : > { %1054 = vperm.xlu1 %1585, %v1012_v35   ;;  %1049 = vperm.xlu0 %1584, %v1011_v28   ;;  %v1600_v35 = vld [vmem:[%s2075_s4 + $0x10] sm:$0xff]   ;;  %v1601_v28 = vld [vmem:[%s2075_s4 + $0x18] sm:$0xff]  }
 0x2f7   : > { %1064 = vperm.xlu1 %1585, %v1014_v32   ;;  %1059 = vperm.xlu0 %1584, %v1013_v36   ;;  %v1602_v32 = vld [vmem:[%s2075_s4 + $0x20] sm:$0xff]   ;;  %v1603_v36 = vld [vmem:[%s2075_s4 + $0x28] sm:$0xff]  }
 0x2fb   : > { %1074 = vperm.xlu1 %1585, %v1016_v40   ;;  %1069 = vperm.xlu0 %1584, %v1015_v43   ;;  %v1604_v40 = vld [vmem:[%s2075_s4 + $0x30] sm:$0xff]   ;;  %v1605_v43 = vld [vmem:[%s2075_s4 + $0x38] sm:$0xff]  }
 0x2ff   : > { %1084 = vperm.xlu1 %1585, %v1018_v27   ;;  %1079 = vperm.xlu0 %1584, %v1017_v30  }
 0x303   : > { %1094 = vperm.xlu1 %1585, %v1020_v33   ;;  %1089 = vperm.xlu0 %1584, %v1019_v34  }
 0x304   : > { %v1527_v38 = vpop.f32.mrb[8].mxu0 }
 0x305   : > { %v856_v42 = vpop.f32.mrb[9].mxu0 }
 0x306   : > { %v1528_v46 = vpop.f32.mrb[10].mxu0  ;;  %v887_v16 = vadd.f32 %v856_v42, %v774_v13 }
 0x307   : > { %v859_v51 = vpop.f32.mrb[11].mxu0  ;;  %1099 = vperm.xlu0 %1584, %v1021_v41  }
 0x308   : > { %v888_v10 = vadd.f32 %v859_v51, %v775_v15  ;;  %v1249_v51 = vld [vmem:[%s2007_s26 + $0x10] sm:$0xff] }
 0x314   : > { %v1531_v45 = vpop.f32.mrb[12].mxu0 }
 0x315   : > { %v872_v52 = vpop.f32.mrb[13].mxu0 }
 0x316   : > { %v1532_v47 = vpop.f32.mrb[14].mxu0 }
 0x317   : > { %v875_v54 = vpop.f32.mrb[15].mxu0 }
 0x34a   : > { %v941_v11 = vpop.permute.xlu1 %940 }
 0x34b   : > { %v978_v60 = vmul.f32 %v941_v11, %v887_v16  ;;  %v1250_v11 = vld [vmem:[%s2007_s26 + $0x18] sm:$0xff] }
 0x34e   : > { %v946_v49 = vpop.permute.xlu0 %945  ;;  %v747_v59 = vpop.permute.xlu1 %746 }
 0x34f   : > { %v979_v20 = vmul.f32 %v946_v49, %v888_v10  ;;  %v776_v9 = vmul.f32 0.0, %v747_v59  ;;  %v1248_v10 = vld [vmem:[%s2007_s26 + $0x8] sm:$0xff] }
 0x351   : > { %v1002_v22 = vpack.c.bf16 %v979_v20, %v978_v60  ;;  %v889_v25 = vadd.f32 %v1527_v38, %v776_v9 }
 0x352   : > { %v752_v14 = vpop.permute.xlu0 %751  ;;  %v951_v23 = vpop.permute.xlu1 %950 }
 0x353   : > { %v777_v24 = vmul.f32 0.0, %v752_v14  ;;  %1533 = vmatprep.subr.bf16.mxu1 %v1002_v22  ;;  %v980_v31 = vmul.f32 %v951_v23, %v889_v25  ;;  %v1253_v23 = vld [vmem:[%s2007_s26 + $0x30] sm:$0xff] }
 0x354   : > { %1534 = vmatpush3.bf16.xpose.msra.mxu1 %v1002_v22 }
 0x355   : > { %v890_v26 = vadd.f32 %v1528_v46, %v777_v24 }
 0x356   : > { %v956_v12 = vpop.permute.xlu0 %955  ;;  %v757_v29 = vpop.permute.xlu1 %756 }
 0x357   : > { %v981_v17 = vmul.f32 %v956_v12, %v890_v26  ;;  %v778_v37 = vmul.f32 0.0, %v757_v29  ;;  %v1251_v26 = vld [vmem:[%s2007_s26 + $0x20] sm:$0xff] }
 0x359   : > { %v1003_v39 = vpack.c.bf16 %v981_v17, %v980_v31  ;;  %v891_v50 = vadd.f32 %v872_v52, %v778_v37  ;;  %v1254_v31 = vld [vmem:[%s2007_s26 + $0x38] sm:$0xff] }
 0x35a   : > { %v762_v18 = vpop.permute.xlu0 %761  ;;  %v961_v44 = vpop.permute.xlu1 %960 }
 0x35b   : > { %v779_v48 = vmul.f32 0.0, %v762_v18  ;;  %1535 = vmatprep.subr.bf16.mxu1 %v1003_v39  ;;  %v982_v57 = vmul.f32 %v961_v44, %v891_v50  ;;  %v1252_v18 = vld [vmem:[%s2007_s26 + $0x28] sm:$0xff] }
 0x35c   : > { %1536 = vmatpush3.bf16.xpose.msra.mxu1 %v1003_v39 }
 0x35d   : > { %v892_v21 = vadd.f32 %v875_v54, %v779_v48 }
 0x35e   : > { %v966_v53 = vpop.permute.xlu0 %965  ;;  %v767_v56 = vpop.permute.xlu1 %766 }
 0x35f   : > { %v983_v61 = vmul.f32 %v966_v53, %v892_v21  ;;  %v780_v62 = vmul.f32 0.0, %v767_v56 }
 0x361   : > { %v1004_v63 = vpack.c.bf16 %v983_v61, %v982_v57  ;;  %v893_v1 = vadd.f32 %v1531_v45, %v780_v62  ;;  %v1257_v61 = vld [vmem:[%s2007_s26 + $0x50] sm:$0xff] }
 0x362   : > { %v772_v0 = vpop.permute.xlu0 %771  ;;  %v971_v2 = vpop.permute.xlu1 %970 }
 0x363   : > { %v781_v19 = vmul.f32 0.0, %v772_v0  ;;  %1537 = vmatprep.subr.bf16.mxu1 %v1004_v63  ;;  %v984_v5 = vmul.f32 %v971_v2, %v893_v1  ;;  %v1255_v0 = vld [vmem:[%s2007_s26 + $0x40] sm:$0xff] }
 0x364   : > { %1538 = vmatpush3.bf16.xpose.msra.mxu1 %v1004_v63 }
 0x365   : > { %v894_v3 = vadd.f32 %v1532_v47, %v781_v19  ;;  %v1247_v47 = vld [vmem:[%s2007_s26] sm:$0xff] }
 0x366   : > { %v976_v4 = vpop.permute.xlu0 %975  ;;  %v1025_v27 = vpop.permute.xlu1 %1024 }
 0x367   : > { %v985_v6 = vmul.f32 %v976_v4, %v894_v3  ;;  %v1258_v3 = vld [vmem:[%s2007_s26 + $0x58] sm:$0xff] }
 0x369   : > { %v1005_v7 = vpack.c.bf16 %v985_v6, %v984_v5 }
 0x36a   : > { %v1030_v30 = vpop.permute.xlu0 %1029  ;;  %v1035_v33 = vpop.permute.xlu1 %1034 }
 0x36b   : > { %1539 = vmatprep.subr.bf16.mxu1 %v1005_v7 }
 0x36c   : > { %1540 = vmatpush3.bf16.xpose.msra.mxu1 %v1005_v7  ;;  %v1256_v7 = vld [vmem:[%s2007_s26 + $0x48] sm:$0xff] }
 0x36e   : > { %v1040_v34 = vpop.permute.xlu0 %1039  ;;  %v1045_v38 = vpop.permute.xlu1 %1044 }
 0x372   : > { %v1050_v41 = vpop.permute.xlu0 %1049  ;;  %v1055_v42 = vpop.permute.xlu1 %1054 }
 0x373   : > { %1542 = vmatmul.mubr.bf16.vlgmr.msra.gmra.mrb[0].mxu1 %v1599_v8 }
 0x374   : > { %1545 = vmatprep.mubr.bf16.mxu1 %v1600_v35 }
 0x376   : > { %v1060_v54 = vpop.permute.xlu0 %1059  ;;  %v1065_v20 = vpop.permute.xlu1 %1064 }
 0x37a   : > { %v1070_v22 = vpop.permute.xlu0 %1069  ;;  %v1075_v44 = vpop.permute.xlu1 %1074 }
 0x37b   : > { %1546 = vmatmul.mubr.bf16.gmra.mrb[4].mxu1 %v1601_v28 }
 0x37c   : > { %1549 = vmatprep.mubr.bf16.mxu1 %v1602_v32 }
 0x37e   : > { %v1080_v53 = vpop.permute.xlu0 %1079  ;;  %v1085_v19 = vpop.permute.xlu1 %1084 }
 0x382   : > { %v1090_v8 = vpop.permute.xlu0 %1089 }
 0x383   : > { %1550 = vmatmul.mubr.bf16.gmra.mrb[8].mxu1 %v1603_v36 }
 0x384   : > { %1553 = vmatprep.mubr.bf16.mxu1 %v1604_v40  ;;  %v1095_v40 = vpop.permute.xlu1 %1094 }
 0x38b   : > { %1554 = vmatmul.mubr.bf16.gmra.mrb[12].mxu1 %v1605_v43 }
 0x446   : > { %v1543_v46 = vpop.f32.mrb[0].mxu1 }
 0x447   : > { %v1193_v45 = vadd.f32 %v1543_v46, %v1035_v33  ;;  %v1184_v52 = vpop.f32.mrb[1].mxu1  ;;  %v1262_v46 = vld [vmem:[%s2007_s26 + $0x78] sm:$0xff] }
 0x448   : > { %v1185_v55 = vadd.f32 %v1184_v52, %v1025_v27  ;;  %v1544_v58 = vpop.f32.mrb[2].mxu1  ;;  %v1261_v27 = vld [vmem:[%s2007_s26 + $0x70] sm:$0xff] }
 0x449   : > { %v1265_v13 = vadd.f32 %v1249_v51, %v1193_v45  ;;  %v1196_v15 = vadd.f32 %v1544_v58, %v1040_v34  ;;  %v1187_v16 = vpop.f32.mrb[3].mxu1  ;;  %v1259_v34 = vld [vmem:[%s2007_s26 + $0x60] sm:$0xff] }
 0x44a   : > { %v1263_v49 = vadd.f32 %v1247_v47, %v1185_v55  ;;  %v1188_v59 = vadd.f32 %v1187_v16, %v1030_v30  ;;  %v1260_v47 = vld [vmem:[%s2007_s26 + $0x68] sm:$0xff] }
 0x44b   : > { %1281 = vst.msk [vmem:[%s2014_s21 + $0x10] sm:$0xff] %vm548_vm1, %v1265_v13  ;;  %v1266_v60 = vadd.f32 %v1250_v11, %v1196_v15 }
 0x44c   : > { %1279 = vst.msk [vmem:[%s2014_s21] sm:$0xff] %vm548_vm1, %v1263_v49  ;;  %v1264_v9 = vadd.f32 %v1248_v10, %v1188_v59 }
 0x44d   : > { %1282 = vst.msk [vmem:[%s2014_s21 + $0x18] sm:$0xff] %vm548_vm1, %v1266_v60 }
 0x44e   : > { %1280 = vst.msk [vmem:[%s2014_s21 + $0x8] sm:$0xff] %vm548_vm1, %v1264_v9  ;;  %v1547_v14 = vpop.f32.mrb[4].mxu1 }
 0x44f   : > { %v1209_v24 = vadd.f32 %v1547_v14, %v1055_v42  ;;  %v1200_v25 = vpop.f32.mrb[5].mxu1 }
 0x450   : > { %v1201_v12 = vadd.f32 %v1200_v25, %v1045_v38  ;;  %v1548_v29 = vpop.f32.mrb[6].mxu1  ;;  %v1100_v38 = vpop.permute.xlu0 %1099 }
 0x451   : > { %v1269_v17 = vadd.f32 %v1253_v23, %v1209_v24  ;;  %v1212_v37 = vadd.f32 %v1548_v29, %v1060_v54  ;;  %v1203_v39 = vpop.f32.mrb[7].mxu1 }
 0x452   : > { %v1267_v48 = vadd.f32 %v1251_v26, %v1201_v12  ;;  %v1204_v50 = vadd.f32 %v1203_v39, %v1050_v41 }
 0x453   : > { %1285 = vst.msk [vmem:[%s2014_s21 + $0x30] sm:$0xff] %vm548_vm1, %v1269_v17  ;;  %v1270_v21 = vadd.f32 %v1254_v31, %v1212_v37 }
 0x454   : > { %1283 = vst.msk [vmem:[%s2014_s21 + $0x20] sm:$0xff] %vm548_vm1, %v1267_v48  ;;  %v1268_v56 = vadd.f32 %v1252_v18, %v1204_v50 }
 0x455   : > { %1286 = vst.msk [vmem:[%s2014_s21 + $0x38] sm:$0xff] %vm548_vm1, %v1270_v21 }
 0x456   : > { %1284 = vst.msk [vmem:[%s2014_s21 + $0x28] sm:$0xff] %vm548_vm1, %v1268_v56  ;;  %v1551_v57 = vpop.f32.mrb[8].mxu1 }
 0x457   : > { %v1225_v62 = vadd.f32 %v1551_v57, %v1075_v44  ;;  %v1216_v63 = vpop.f32.mrb[9].mxu1 }
 0x458   : > { %v1217_v1 = vadd.f32 %v1216_v63, %v1065_v20  ;;  %v1552_v2 = vpop.f32.mrb[10].mxu1 }
 0x459   : > { %v1273_v4 = vadd.f32 %v1257_v61, %v1225_v62  ;;  %v1228_v5 = vadd.f32 %v1552_v2, %v1080_v53  ;;  %v1219_v6 = vpop.f32.mrb[11].mxu1 }
 0x45a   : > { %v1271_v35 = vadd.f32 %v1255_v0, %v1217_v1  ;;  %v1220_v28 = vadd.f32 %v1219_v6, %v1070_v22 }
 0x45b   : > { %1289 = vst.msk [vmem:[%s2014_s21 + $0x50] sm:$0xff] %vm548_vm1, %v1273_v4  ;;  %v1274_v32 = vadd.f32 %v1258_v3, %v1228_v5 }
 0x45c   : > { %1287 = vst.msk [vmem:[%s2014_s21 + $0x40] sm:$0xff] %vm548_vm1, %v1271_v35  ;;  %v1272_v36 = vadd.f32 %v1256_v7, %v1220_v28 }
 0x45d   : > { %1290 = vst.msk [vmem:[%s2014_s21 + $0x58] sm:$0xff] %vm548_vm1, %v1274_v32 }
 0x45e   : > { %1288 = vst.msk [vmem:[%s2014_s21 + $0x48] sm:$0xff] %vm548_vm1, %v1272_v36  ;;  %v1555_v43 = vpop.f32.mrb[12].mxu1 }
 0x45f   : > { %v1241_v30 = vadd.f32 %v1555_v43, %v1095_v40  ;;  %v1232_v33 = vpop.f32.mrb[13].mxu1 }
 0x460   : > { %v1233_v41 = vadd.f32 %v1232_v33, %v1085_v19  ;;  %v1556_v42 = vpop.f32.mrb[14].mxu1 }
 0x461   : > { %v1277_v51 = vadd.f32 %v1261_v27, %v1241_v30  ;;  %v1244_v45 = vadd.f32 %v1556_v42, %v1100_v38  ;;  %v1235_v52 = vpop.f32.mrb[15].mxu1 }
 0x462   : > { %v1275_v54 = vadd.f32 %v1259_v34, %v1233_v41  ;;  %v1236_v55 = vadd.f32 %v1235_v52, %v1090_v8 }
 0x463   : > { %1293 = vst.msk [vmem:[%s2014_s21 + $0x70] sm:$0xff] %vm548_vm1, %v1277_v51  ;;  %v1278_v58 = vadd.f32 %v1262_v46, %v1244_v45 }
 0x464   : > { %1291 = vst.msk [vmem:[%s2014_s21 + $0x60] sm:$0xff] %vm548_vm1, %v1275_v54  ;;  %v1276_v11 = vadd.f32 %v1260_v47, %v1236_v55 }
 0x465   : > { %1294 = vst.msk [vmem:[%s2014_s21 + $0x78] sm:$0xff] %vm548_vm1, %v1278_v58 }
 0x466   : > { %1292 = vst.msk [vmem:[%s2014_s21 + $0x68] sm:$0xff] %vm548_vm1, %v1276_v11 }
 0x467 PF: > { %s16_s23 = sadd.s32 1, %s1676_s23   ;;  %s2078_s21 = smov %s1672_s22 }
 0x468   : > { %p13_p5 = scmp.ge.s32.totalorder %s16_s23, 4   ;;  %s2079_s22 = smov %s2081_s24 }
 0x46a   :  { %15 = sbr.rel (!%p13_p5) target bundleno = 2 (0x2), region = 93 }

// kernel: attn_block_pallas.4
= control target key start
LH: loop header
LB: loop body
LE: loop exit
PB: predicated region body
PF: predicated region fallthrough
CT: control target
= control target key end

     0   :  { %s1845_s30 = smov 0   ;;  %s1847_s10 = smov 0   ;;  %s2168_s0 = inlined_call_operand.vmem [shape: f32[2,128,64], index: 0, kind: input, shape index: {}]   ;;  %s2169_s1 = inlined_call_operand.vmem [shape: f32[2,128,1], index: 1, kind: input, shape index: {}]   ;;  %s2170_s2 = inlined_call_operand.vmem [shape: f32[2,128,1], index: 2, kind: input, shape index: {}]   ;;  %s2171_s3 = inlined_call_operand.vmem [shape: f32[128,1], index: 3, kind: input, shape index: {}]   ;;  %s2172_s4 = inlined_call_operand.vmem [shape: f32[128,1], index: 4, kind: input, shape index: {}]   ;;  %s2173_s5 = inlined_call_operand.vmem [shape: bf16[128,384], index: 5, kind: input, shape index: {}]   ;;  %s2174_s6 = inlined_call_operand.vmem [shape: f32[1,384], index: 6, kind: input, shape index: {}]   ;;  %s2175_s7 = inlined_call_operand.vmem [shape: bf16[2,64,128], index: 7, kind: output, shape index: {0}]   ;;  %s2176_s8 = inlined_call_operand.vmem [shape: bf16[2,64,128], index: 8, kind: output, shape index: {1}]   ;;  %s2177_s9 = inlined_call_operand.vmem [shape: bf16[2,64,128], index: 9, kind: output, shape index: {2}]  }
   0x1   :  { %s1849_s11 = smov 0  }
   0x2 LB: > { %s32_s12 = sadd.s32 1, %s1788_s10  ;;  %p1513_p0 = scmp.ge.s32.totalorder %s1792_s11, 1  ;;  %s1792_s11 = sphi %s1849_s11, %s20_s11   ;;  %s1788_s10 = sphi %s1847_s10, %s2179_s10   ;;  %s1784_s30 = sphi %s1845_s30, %s2178_s30  }
   0x3   : > { %p34_p1 = scmp.ge.s32.totalorder %s32_s12, 2  ;;  %p335_p2 = scmp.lt.s32.totalorder %s1792_s11, 3 }
   0x5   : > { %s2181_s12 = smov (%p34_p1, %s32_s12), 0  ;;  %p336_p3 = pnand %p1513_p0, %p335_p2 }
   0x6   : > { %p406_p4 = scmp.lt.s32.totalorder (!%p336_p3), %s1784_s30, 1  ;;  %v1794_v0 = vmov (!%p336_p3), 0   ;;  %v600_v4 = vld [vmem:[%s2171_s3 + $0x8] sm:$0xff] (!%p336_p3)  ;;  %v599_v5 = vld [vmem:[%s2171_s3] sm:$0xff] (!%p336_p3)  ;;  %v602_v12 = vld [vmem:[%s2171_s3 + $0x18] sm:$0xff] (!%p336_p3) }
   0x7   : > { %339 = sbr.rel (%p336_p3) target bundleno = 561 (0x231), region = 48  ;;  %1737 = vset.pattern.permute.xlu1 (!%p336_p3), %v1794_v0  ;;  %1736 = vset.pattern.permute.xlu0 (!%p336_p3), %v1794_v0  ;;  %v601_v13 = vld [vmem:[%s2171_s3 + $0x10] sm:$0xff] (!%p336_p3)  ;;  %v728_v19 = vld [vmem:[%s2172_s4 + $0x8] sm:$0xff] (!%p336_p3)  ;;  %v727_v20 = vld [vmem:[%s2172_s4] sm:$0xff] (!%p336_p3) }
   0x8   : > { %1072 = vmatprep.mubr.bf16.mxu0 (!%p336_p3), %v1794_v0  ;;  %v604_v24 = vld [vmem:[%s2171_s3 + $0x28] sm:$0xff] (!%p336_p3)  ;;  %v603_v26 = vld [vmem:[%s2171_s3 + $0x20] sm:$0xff] (!%p336_p3)  ;;  %v730_v29 = vld [vmem:[%s2172_s4 + $0x18] sm:$0xff] (!%p336_p3) }
   0x9   : > { %v729_v30 = vld [vmem:[%s2172_s4 + $0x10] sm:$0xff] (!%p336_p3)  ;;  %v606_v32 = vld [vmem:[%s2171_s3 + $0x38] sm:$0xff] (!%p336_p3)  ;;  %v732_v39 = vld [vmem:[%s2172_s4 + $0x28] sm:$0xff] (!%p336_p3) }
   0xa   : > { %v605_v33 = vld [vmem:[%s2171_s3 + $0x30] sm:$0xff] (!%p336_p3)  ;;  %v731_v40 = vld [vmem:[%s2172_s4 + $0x20] sm:$0xff] (!%p336_p3)  ;;  %v608_v42 = vld [vmem:[%s2171_s3 + $0x48] sm:$0xff] (!%p336_p3) }
   0xb   : > { %v607_v43 = vld [vmem:[%s2171_s3 + $0x40] sm:$0xff] (!%p336_p3)  ;;  %v734_v49 = vld [vmem:[%s2172_s4 + $0x38] sm:$0xff] (!%p336_p3)  ;;  %v733_v50 = vld [vmem:[%s2172_s4 + $0x30] sm:$0xff] (!%p336_p3) }
   0xc   : > { %v610_v54 = vld [vmem:[%s2171_s3 + $0x58] sm:$0xff] (!%p336_p3)  ;;  %v609_v56 = vld [vmem:[%s2171_s3 + $0x50] sm:$0xff] (!%p336_p3)  ;;  %v736_v59 = vld [vmem:[%s2172_s4 + $0x48] sm:$0xff] (!%p336_p3) }
   0xd   : > { %v735_v60 = vld [vmem:[%s2172_s4 + $0x40] sm:$0xff] (!%p336_p3) }
   0xe   : > { %s2183_s30 = smov (!%p406_p4, %s1784_s30), 1 }
   0xf   : > { %s1869_s13 = sshll.u32 %s2183_s30, 7  ;;  %s1579_s29 = sshll.u32 %s2183_s30, 5 }
  0x10   : > { %s1875_s16 = scalar_lea.vmem %s2169_s1, %s1869_s13  ;;  %s1881_s19 = scalar_lea.vmem %s2170_s2, %s1869_s13 }
  0x11   : > { %v473_v1 = vld [vmem:[%s1875_s16 + $0x10] sm:$0xff]  ;;  %v471_v2 = vld [vmem:[%s1875_s16] sm:$0xff]  ;;  %v474_v3 = vld [vmem:[%s1875_s16 + $0x18] sm:$0xff]  ;;  %s2084_s26 = scalar_lea.vmem %s2168_s0, %s1869_s13  ;;  %s2122_s17 = scalar_lea.vmem %s2175_s7, %s1579_s29 }
  0x12   : > { %499 = vperm.xlu1 %1737, %v473_v1   ;;  %489 = vperm.xlu0 %1736, %v471_v2   ;;  %v472_v6 = vld [vmem:[%s1875_s16 + $0x8] sm:$0xff]  ;;  %v583_v8 = vld [vmem:[%s1881_s19] sm:$0xff]  ;;  %v586_v15 = vld [vmem:[%s1881_s19 + $0x18] sm:$0xff]  ;;  %s2128_s20 = scalar_lea.vmem %s2176_s8, %s1579_s29 }
  0x13   : > { %v584_v7 = vld [vmem:[%s1881_s19 + $0x8] sm:$0xff]  ;;  %v615_v10 = vmul.f32 %v599_v5, %v583_v8  ;;  %v475_v14 = vld [vmem:[%s1875_s16 + $0x20] sm:$0xff]  ;;  %v585_v16 = vld [vmem:[%s1881_s19 + $0x10] sm:$0xff]  ;;  %v618_v17 = vmul.f32 %v602_v12, %v586_v15 }
  0x14   : > { %v616_v9 = vmul.f32 %v600_v4, %v584_v7  ;;  %v476_v11 = vld [vmem:[%s1875_s16 + $0x28] sm:$0xff]  ;;  %v617_v18 = vmul.f32 %v601_v13, %v585_v16  ;;  %v478_v21 = vld [vmem:[%s1875_s16 + $0x38] sm:$0xff]  ;;  %v477_v22 = vld [vmem:[%s1875_s16 + $0x30] sm:$0xff] }
  0x15   : > { %v588_v23 = vld [vmem:[%s1881_s19 + $0x28] sm:$0xff]  ;;  %v587_v25 = vld [vmem:[%s1881_s19 + $0x20] sm:$0xff]  ;;  %v590_v35 = vld [vmem:[%s1881_s19 + $0x38] sm:$0xff] }
  0x16   : > { %504 = vperm.xlu1 %1737, %v474_v3   ;;  %494 = vperm.xlu0 %1736, %v472_v6   ;;  %v620_v27 = vmul.f32 %v604_v24, %v588_v23  ;;  %v619_v28 = vmul.f32 %v603_v26, %v587_v25  ;;  %v480_v31 = vld [vmem:[%s1875_s16 + $0x48] sm:$0xff]  ;;  %v479_v34 = vld [vmem:[%s1875_s16 + $0x40] sm:$0xff]  ;;  %v589_v36 = vld [vmem:[%s1881_s19 + $0x30] sm:$0xff]  ;;  %v622_v37 = vmul.f32 %v606_v32, %v590_v35 }
  0x17   : > { %v621_v38 = vmul.f32 %v605_v33, %v589_v36  ;;  %v482_v41 = vld [vmem:[%s1875_s16 + $0x58] sm:$0xff]  ;;  %v481_v44 = vld [vmem:[%s1875_s16 + $0x50] sm:$0xff]  ;;  %v592_v45 = vld [vmem:[%s1881_s19 + $0x48] sm:$0xff] }
  0x18   : > { %v591_v46 = vld [vmem:[%s1881_s19 + $0x40] sm:$0xff]  ;;  %v624_v47 = vmul.f32 %v608_v42, %v592_v45  ;;  %v484_v51 = vld [vmem:[%s1875_s16 + $0x68] sm:$0xff]  ;;  %v594_v53 = vld [vmem:[%s1881_s19 + $0x58] sm:$0xff] }
  0x19   : > { %v623_v48 = vmul.f32 %v607_v43, %v591_v46  ;;  %v483_v52 = vld [vmem:[%s1875_s16 + $0x60] sm:$0xff]  ;;  %v593_v55 = vld [vmem:[%s1881_s19 + $0x50] sm:$0xff]  ;;  %v626_v57 = vmul.f32 %v610_v54, %v594_v53  ;;  %v486_v61 = vld [vmem:[%s1875_s16 + $0x78] sm:$0xff] }
  0x1a   : > { %638 = vperm.xlu1 %1737, %v616_v9   ;;  %633 = vperm.xlu0 %1736, %v615_v10   ;;  %v625_v58 = vmul.f32 %v609_v56, %v593_v55  ;;  %v485_v62 = vld [vmem:[%s1875_s16 + $0x70] sm:$0xff]  ;;  %v596_v63 = vld [vmem:[%s1881_s19 + $0x68] sm:$0xff]  ;;  %v595_v2 = vld [vmem:[%s1881_s19 + $0x60] sm:$0xff] }
  0x1b   : > { %v612_v1 = vld [vmem:[%s2171_s3 + $0x68] sm:$0xff]  ;;  %v611_v3 = vld [vmem:[%s2171_s3 + $0x60] sm:$0xff]  ;;  %v738_v6 = vld [vmem:[%s2172_s4 + $0x58] sm:$0xff] }
  0x1c   : > { %v628_v4 = vmul.f32 %v612_v1, %v596_v63  ;;  %v627_v5 = vmul.f32 %v611_v3, %v595_v2  ;;  %v737_v7 = vld [vmem:[%s2172_s4 + $0x50] sm:$0xff]  ;;  %v598_v8 = vld [vmem:[%s1881_s19 + $0x78] sm:$0xff]  ;;  %v739_v15 = vld [vmem:[%s2172_s4 + $0x60] sm:$0xff] }
  0x1d   : > { %v614_v9 = vld [vmem:[%s2171_s3 + $0x78] sm:$0xff]  ;;  %v597_v10 = vld [vmem:[%s1881_s19 + $0x70] sm:$0xff]  ;;  %v1755_v32 = vld [vmem:[%s2173_s5 + $0x60] ss:$12 sps:$4 sm:$0xff]   ;;  %s2135_s19 = scalar_lea.vmem %s2177_s9, %s1579_s29 }
  0x1e   : > { %514 = vperm.xlu1 %1737, %v476_v11   ;;  %509 = vperm.xlu0 %1736, %v475_v14   ;;  %v613_v11 = vld [vmem:[%s2171_s3 + $0x70] sm:$0xff]  ;;  %v630_v12 = vmul.f32 %v614_v9, %v598_v8  ;;  %v740_v14 = vld [vmem:[%s2172_s4 + $0x68] sm:$0xff]  ;;  %v742_v16 = vld [vmem:[%s2172_s4 + $0x78] sm:$0xff] }
  0x1f   : > { %v629_v13 = vmul.f32 %v613_v11, %v597_v10  ;;  %v1743_v23 = vld [vmem:[%s2173_s5 + $0x18] ss:$12 sps:$4 sm:$0xff]   ;;  %v1745_v24 = vld [vmem:[%s2173_s5 + $0x34] ss:$12 sps:$4 sm:$0xff]   ;;  %v1747_v26 = vld [vmem:[%s2173_s5 + $0x30] ss:$12 sps:$4 sm:$0xff]  }
  0x20   : > { %v1752_v25 = vld [vmem:[%s2173_s5 + $0x38] ss:$12 sps:$4 sm:$0xff]   ;;  %v1757_v33 = vld [vmem:[%s2173_s5 + $0x7c] ss:$12 sps:$4 sm:$0xff]   ;;  %v1761_v36 = vld [vmem:[%s2173_s5 + $0x94] ss:$12 sps:$4 sm:$0xff]  }
  0x21   : > { %v1759_v35 = vld [vmem:[%s2173_s5 + $0x78] ss:$12 sps:$4 sm:$0xff]   ;;  %v457_v1 = vld [vmem:[%s2084_s26 + $0x10] sm:$0xff] }
  0x22   : > { %648 = vperm.xlu1 %1737, %v618_v17   ;;  %643 = vperm.xlu0 %1736, %v617_v18   ;;  %v741_v17 = vld [vmem:[%s2172_s4 + $0x70] sm:$0xff]  ;;  %v458_v2 = vld [vmem:[%s2084_s26 + $0x18] sm:$0xff] }
  0x23   : > { %v1738_v18 = vld [vmem:[%s2173_s5 + $0x4] ss:$12 sps:$4 sm:$0xff]  }
  0x24   : > { %1040 = vmatprep.subr.bf16.mxu0 %v1738_v18 }
  0x26   : > { %750 = vperm.xlu1 %1737, %v728_v19   ;;  %745 = vperm.xlu0 %1736, %v727_v20   ;;  %v1740_v19 = vld [vmem:[%s2173_s5] ss:$12 sps:$4 sm:$0xff]   ;;  %v1741_v20 = vld [vmem:[%s2173_s5 + $0x1c] ss:$12 sps:$4 sm:$0xff]  }
  0x27   : > { %1041 = vmatpush1.bf16.msra.mxu0 %v1740_v19 }
  0x28   : > { %1042 = vmatprep.subr.bf16.mxu0 %v1741_v20 }
  0x2a   : > { %524 = vperm.xlu1 %1737, %v478_v21   ;;  %519 = vperm.xlu0 %1736, %v477_v22   ;;  %v1744_v21 = vld [vmem:[%s2173_s5 + $0x8] ss:$12 sps:$4 sm:$0xff]   ;;  %v1748_v22 = vld [vmem:[%s2173_s5 + $0x20] ss:$12 sps:$4 sm:$0xff]  }
  0x2b   : > { %1687 = vmatprep.subr.bf16.mxu1 %v1744_v21  ;;  %1043 = vmatpush1.bf16.msra.mxu0 %v1743_v23 }
  0x2c   : > { %1688 = vmatpush3.bf16.msra.mxu1 %v1744_v21  ;;  %1044 = vmatprep.subr.bf16.mxu0 %v1745_v24  ;;  %v1769_v24 = vld [vmem:[%s2173_s5 + $0xb0] ss:$12 sps:$4 sm:$0xff]  }
  0x2d   : > { %1689 = vmatprep.subr.bf16.mxu1 %v1748_v22 }
  0x2e   : > { %658 = vperm.xlu1 %1737, %v620_v27   ;;  %653 = vperm.xlu0 %1736, %v619_v28   ;;  %v1749_v27 = vld [vmem:[%s2173_s5 + $0x4c] ss:$12 sps:$4 sm:$0xff]   ;;  %v1756_v28 = vld [vmem:[%s2173_s5 + $0x50] ss:$12 sps:$4 sm:$0xff]  }
  0x2f   : > { %1045 = vmatpush1.bf16.msra.mxu0 %v1747_v26 }
  0x30   : > { %1690 = vmatpush3.bf16.msra.mxu1 %v1748_v22  ;;  %1046 = vmatprep.subr.bf16.mxu0 %v1749_v27 }
  0x31   : > { %1691 = vmatprep.subr.bf16.mxu1 %v1752_v25 }
  0x32   : > { %760 = vperm.xlu1 %1737, %v730_v29   ;;  %755 = vperm.xlu0 %1736, %v729_v30   ;;  %v1751_v29 = vld [vmem:[%s2173_s5 + $0x48] ss:$12 sps:$4 sm:$0xff]   ;;  %v1753_v30 = vld [vmem:[%s2173_s5 + $0x64] ss:$12 sps:$4 sm:$0xff]  }
  0x33   : > { %1047 = vmatpush1.bf16.msra.mxu0 %v1751_v29 }
  0x34   : > { %1692 = vmatpush3.bf16.msra.mxu1 %v1752_v25  ;;  %1048 = vmatprep.subr.bf16.mxu0 %v1753_v30 }
  0x35   : > { %1693 = vmatprep.subr.bf16.mxu1 %v1756_v28 }
  0x36   : > { %534 = vperm.xlu1 %1737, %v480_v31   ;;  %529 = vperm.xlu0 %1736, %v479_v34   ;;  %v1760_v31 = vld [vmem:[%s2173_s5 + $0x68] ss:$12 sps:$4 sm:$0xff]   ;;  %v1764_v34 = vld [vmem:[%s2173_s5 + $0x80] ss:$12 sps:$4 sm:$0xff]  }
  0x37   : > { %1049 = vmatpush1.bf16.msra.mxu0 %v1755_v32  ;;  %v462_v32 = vld [vmem:[%s2084_s26 + $0x38] sm:$0xff] }
  0x38   : > { %1694 = vmatpush3.bf16.msra.mxu1 %v1756_v28  ;;  %1050 = vmatprep.subr.bf16.mxu0 %v1757_v33  ;;  %v461_v33 = vld [vmem:[%s2084_s26 + $0x30] sm:$0xff] }
  0x39   : > { %1695 = vmatprep.subr.bf16.mxu1 %v1760_v31 }
  0x3a   : > { %668 = vperm.xlu1 %1737, %v622_v37   ;;  %663 = vperm.xlu0 %1736, %v621_v38   ;;  %v1768_v37 = vld [vmem:[%s2173_s5 + $0x98] ss:$12 sps:$4 sm:$0xff]   ;;  %v1763_v38 = vld [vmem:[%s2173_s5 + $0x90] ss:$12 sps:$4 sm:$0xff]  }
  0x3b   : > { %1051 = vmatpush1.bf16.msra.mxu0 %v1759_v35 }
  0x3c   : > { %1696 = vmatpush3.bf16.msra.mxu1 %v1760_v31  ;;  %1052 = vmatprep.subr.bf16.mxu0 %v1761_v36 }
  0x3d   : > { %1697 = vmatprep.subr.bf16.mxu1 %v1764_v34 }
  0x3e   : > { %770 = vperm.xlu1 %1737, %v732_v39   ;;  %765 = vperm.xlu0 %1736, %v731_v40   ;;  %v1765_v39 = vld [vmem:[%s2173_s5 + $0xac] ss:$12 sps:$4 sm:$0xff]   ;;  %v1767_v40 = vld [vmem:[%s2173_s5 + $0xa8] ss:$12 sps:$4 sm:$0xff]  }
  0x3f   : > { %1053 = vmatpush1.bf16.msra.mxu0 %v1763_v38 }
  0x40   : > { %1698 = vmatpush3.bf16.msra.mxu1 %v1764_v34  ;;  %1054 = vmatprep.subr.bf16.mxu0 %v1765_v39 }
  0x41   : > { %1699 = vmatprep.subr.bf16.mxu1 %v1768_v37 }
  0x42   : > { %544 = vperm.xlu1 %1737, %v482_v41   ;;  %539 = vperm.xlu0 %1736, %v481_v44  }
  0x43   : > { %1055 = vmatpush1.bf16.msra.mxu0 %v1767_v40 }
  0x44   : > { %1700 = vmatpush3.bf16.msra.mxu1 %v1768_v37 }
  0x45   : > { %1701 = vmatprep.subr.bf16.mxu1 %v1769_v24 }
  0x46   : > { %678 = vperm.xlu1 %1737, %v624_v47   ;;  %673 = vperm.xlu0 %1736, %v623_v48  }
  0x48   : > { %1702 = vmatpush3.bf16.msra.mxu1 %v1769_v24 }
  0x4a   : > { %780 = vperm.xlu1 %1737, %v734_v49   ;;  %775 = vperm.xlu0 %1736, %v733_v50   ;;  %v455_v49 = vld [vmem:[%s2084_s26] sm:$0xff]  ;;  %v456_v50 = vld [vmem:[%s2084_s26 + $0x8] sm:$0xff] }
  0x4e   : > { %554 = vperm.xlu1 %1737, %v484_v51   ;;  %549 = vperm.xlu0 %1736, %v483_v52  }
  0x52   : > { %688 = vperm.xlu1 %1737, %v626_v57   ;;  %683 = vperm.xlu0 %1736, %v625_v58  }
  0x56   : > { %790 = vperm.xlu1 %1737, %v736_v59   ;;  %785 = vperm.xlu0 %1736, %v735_v60  }
  0x5a   : > { %564 = vperm.xlu1 %1737, %v486_v61   ;;  %559 = vperm.xlu0 %1736, %v485_v62  }
  0x5e   : > { %698 = vperm.xlu1 %1737, %v628_v4   ;;  %693 = vperm.xlu0 %1736, %v627_v5  }
  0x62   : > { %800 = vperm.xlu1 %1737, %v738_v6   ;;  %795 = vperm.xlu0 %1736, %v737_v7  }
  0x66   : > { %708 = vperm.xlu1 %1737, %v630_v12   ;;  %703 = vperm.xlu0 %1736, %v629_v13  }
  0x6a   : > { %810 = vperm.xlu1 %1737, %v740_v14   ;;  %805 = vperm.xlu0 %1736, %v739_v15  }
  0x6e   : > { %820 = vperm.xlu1 %1737, %v742_v16   ;;  %815 = vperm.xlu0 %1736, %v741_v17   ;;  %v460_v16 = vld [vmem:[%s2084_s26 + $0x28] sm:$0xff]  ;;  %v459_v17 = vld [vmem:[%s2084_s26 + $0x20] sm:$0xff] }
  0x91   : > { %v500_v41 = vpop.permute.xlu1 %499  ;;  %v490_v42 = vpop.permute.xlu0 %489 }
  0x92   : > { %v567_v53 = vsub.f32 %v455_v49, %v490_v42  ;;  %v569_v5 = vsub.f32 %v457_v1, %v500_v41 }
  0x95   : > { %v505_v43 = vpop.permute.xlu1 %504  ;;  %v495_v44 = vpop.permute.xlu0 %494 }
  0x96   : > { %v568_v54 = vsub.f32 %v456_v50, %v495_v44  ;;  %v570_v6 = vsub.f32 %v458_v2, %v505_v43 }
  0x99   : > { %v639_v45 = vpop.permute.xlu1 %638  ;;  %v634_v46 = vpop.permute.xlu0 %633 }
  0x9a   : > { %v712_v55 = vmul.f32 %v639_v45, %v568_v54  ;;  %v711_v56 = vmul.f32 %v634_v46, %v567_v53 }
  0x9d   : > { %v515_v47 = vpop.permute.xlu1 %514  ;;  %v510_v48 = vpop.permute.xlu0 %509 }
  0x9e   : > { %v572_v20 = vsub.f32 %v460_v16, %v515_v47  ;;  %v571_v21 = vsub.f32 %v459_v17, %v510_v48  ;;  %v464_v47 = vld [vmem:[%s2084_s26 + $0x48] sm:$0xff]  ;;  %v463_v48 = vld [vmem:[%s2084_s26 + $0x40] sm:$0xff] }
  0xa1   : > { %v649_v51 = vpop.permute.xlu1 %648  ;;  %v644_v52 = vpop.permute.xlu0 %643 }
  0xa2   : > { %v714_v7 = vmul.f32 %v649_v51, %v570_v6  ;;  %v713_v8 = vmul.f32 %v644_v52, %v569_v5 }
  0xa5   : > { %v751_v57 = vpop.permute.xlu1 %750  ;;  %v746_v58 = vpop.permute.xlu0 %745 }
  0xa6   : > { %v824_v59 = vadd.f32 %v751_v57, %v712_v55  ;;  %v823_v60 = vadd.f32 %v746_v58, %v711_v56 }
  0xa8   : > { %v839_v61 = vpack.c.bf16 %v824_v59, %v823_v60 }
  0xa9   : > { %v525_v62 = vpop.permute.xlu1 %524  ;;  %v520_v63 = vpop.permute.xlu0 %519 }
  0xaa   : > { %896 = vxpose.xlu0.c.b16.start [1/8] (narrow) %v839_v61, 64  ;;  %v574_v36 = vsub.f32 %v462_v32, %v525_v62  ;;  %v573_v37 = vsub.f32 %v461_v33, %v520_v63  ;;  %v466_v62 = vld [vmem:[%s2084_s26 + $0x58] sm:$0xff]  ;;  %v465_v63 = vld [vmem:[%s2084_s26 + $0x50] sm:$0xff] }
  0xad   : > { %v659_v3 = vpop.permute.xlu1 %658  ;;  %v654_v4 = vpop.permute.xlu0 %653 }
  0xae   : > { %v716_v22 = vmul.f32 %v659_v3, %v572_v20  ;;  %v715_v23 = vmul.f32 %v654_v4, %v571_v21 }
  0xb1   : > { %v761_v9 = vpop.permute.xlu1 %760  ;;  %v756_v10 = vpop.permute.xlu0 %755 }
  0xb2   : > { %v826_v11 = vadd.f32 %v761_v9, %v714_v7  ;;  %v825_v12 = vadd.f32 %v756_v10, %v713_v8 }
  0xb4   : > { %v840_v13 = vpack.c.bf16 %v826_v11, %v825_v12  ;;  %v468_v11 = vld [vmem:[%s2084_s26 + $0x68] sm:$0xff]  ;;  %v467_v12 = vld [vmem:[%s2084_s26 + $0x60] sm:$0xff] }
  0xb5   : > { %v535_v14 = vpop.permute.xlu1 %534  ;;  %v530_v15 = vpop.permute.xlu0 %529 }
  0xb6   : > { %897 = vxpose.xlu0.c.b16.cont [2/8] (narrow) %v840_v13, 64  ;;  %v576_v51 = vsub.f32 %v464_v47, %v535_v14  ;;  %v575_v52 = vsub.f32 %v463_v48, %v530_v15 }
  0xb9   : > { %v669_v18 = vpop.permute.xlu1 %668  ;;  %v664_v19 = vpop.permute.xlu0 %663 }
  0xba   : > { %v718_v38 = vmul.f32 %v669_v18, %v574_v36  ;;  %v717_v39 = vmul.f32 %v664_v19, %v573_v37  ;;  %v470_v18 = vld [vmem:[%s2084_s26 + $0x78] sm:$0xff]  ;;  %v469_v19 = vld [vmem:[%s2084_s26 + $0x70] sm:$0xff] }
  0xbd   : > { %v771_v25 = vpop.permute.xlu1 %770  ;;  %v766_v26 = vpop.permute.xlu0 %765 }
  0xbe   : > { %v828_v27 = vadd.f32 %v771_v25, %v716_v22  ;;  %v827_v28 = vadd.f32 %v766_v26, %v715_v23 }
  0xc0   : > { %v841_v29 = vpack.c.bf16 %v828_v27, %v827_v28 }
  0xc1   : > { %v545_v30 = vpop.permute.xlu1 %544  ;;  %v540_v31 = vpop.permute.xlu0 %539 }
  0xc2   : > { %898 = vxpose.xlu0.c.b16.cont [3/8] (narrow) %v841_v29, 64  ;;  %v578_v3 = vsub.f32 %v466_v62, %v545_v30  ;;  %v577_v4 = vsub.f32 %v465_v63, %v540_v31 }
  0xc5   : > { %v679_v34 = vpop.permute.xlu1 %678  ;;  %v674_v35 = vpop.permute.xlu0 %673 }
  0xc6   : > { %v720_v53 = vmul.f32 %v679_v34, %v576_v51  ;;  %v719_v54 = vmul.f32 %v674_v35, %v575_v52 }
  0xc9   : > { %v781_v40 = vpop.permute.xlu1 %780  ;;  %v776_v41 = vpop.permute.xlu0 %775 }
  0xca   : > { %v830_v42 = vadd.f32 %v781_v40, %v718_v38  ;;  %v829_v43 = vadd.f32 %v776_v41, %v717_v39  ;;  %v881_v40 = vlaneseq }
  0xcc   : > { %v842_v44 = vpack.c.bf16 %v830_v42, %v829_v43  ;;  %v882_v41 = vshrl.u32 %v881_v40, 7  ;;  %v879_v43 = vld [vmem:[%s2174_s6] sm:$0x7] }
  0xcd   : > { %v555_v45 = vpop.permute.xlu1 %554  ;;  %v550_v46 = vpop.permute.xlu0 %549 }
  0xce   : > { %899 = vxpose.xlu0.c.b16.cont [4/8] (narrow) %v842_v44, 64  ;;  %v580_v16 = vsub.f32 %v468_v11, %v555_v45  ;;  %v579_v17 = vsub.f32 %v467_v12, %v550_v46  ;;  %v883_v42 = vsub.s32 0, %v882_v41  ;;  %v887_v44 = vsub.s32 1, %v882_v41 }
  0xcf   : > { %v891_v45 = vsub.s32 2, %v882_v41 }
  0xd0   : > { %v2111_v46 = vrot.slane %v879_v43, %v883_v42  ;;  %v2113_v48 = vrot.slane %v879_v43, %v887_v44 }
  0xd1   : > { %v689_v49 = vpop.permute.xlu1 %688  ;;  %v684_v50 = vpop.permute.xlu0 %683 }
  0xd2   : > { %v722_v5 = vmul.f32 %v689_v49, %v578_v3  ;;  %v721_v6 = vmul.f32 %v684_v50, %v577_v4  ;;  %v892_v50 = vrot.slane %v879_v43, %v891_v45 }
  0xd5   : > { %v791_v55 = vpop.permute.xlu1 %790  ;;  %v786_v56 = vpop.permute.xlu0 %785 }
  0xd6   : > { %v832_v57 = vadd.f32 %v791_v55, %v720_v53  ;;  %v831_v58 = vadd.f32 %v786_v56, %v719_v54 }
  0xd8   : > { %v843_v59 = vpack.c.bf16 %v832_v57, %v831_v58 }
  0xd9   : > { %v565_v60 = vpop.permute.xlu1 %564  ;;  %v560_v61 = vpop.permute.xlu0 %559 }
  0xda   : > { %900 = vxpose.xlu0.c.b16.cont [5/8] (narrow) %v843_v59, 64  ;;  %v582_v24 = vsub.f32 %v470_v18, %v565_v60  ;;  %v581_v25 = vsub.f32 %v469_v19, %v560_v61 }
  0xdd   : > { %v699_v1 = vpop.permute.xlu1 %698  ;;  %v694_v2 = vpop.permute.xlu0 %693 }
  0xde   : > { %v724_v20 = vmul.f32 %v699_v1, %v580_v16  ;;  %v723_v21 = vmul.f32 %v694_v2, %v579_v17 }
  0xe1   : > { %v801_v7 = vpop.permute.xlu1 %800  ;;  %v796_v8 = vpop.permute.xlu0 %795 }
  0xe2   : > { %v834_v9 = vadd.f32 %v801_v7, %v722_v5  ;;  %v833_v10 = vadd.f32 %v796_v8, %v721_v6 }
  0xe4   : > { %v844_v13 = vpack.c.bf16 %v834_v9, %v833_v10 }
  0xe5   : > { %v709_v14 = vpop.permute.xlu1 %708  ;;  %v704_v15 = vpop.permute.xlu0 %703 }
  0xe6   : > { %901 = vxpose.xlu0.c.b16.cont [6/8] (narrow) %v844_v13, 64  ;;  %v726_v28 = vmul.f32 %v709_v14, %v582_v24  ;;  %v725_v29 = vmul.f32 %v704_v15, %v581_v25 }
  0xe9   : > { %v811_v22 = vpop.permute.xlu1 %810  ;;  %v806_v23 = vpop.permute.xlu0 %805 }
  0xea   : > { %v836_v26 = vadd.f32 %v811_v22, %v724_v20  ;;  %v835_v27 = vadd.f32 %v806_v23, %v723_v21 }
  0xec   : > { %v845_v30 = vpack.c.bf16 %v836_v26, %v835_v27 }
  0xed   : > { %v821_v31 = vpop.permute.xlu1 %820  ;;  %v816_v32 = vpop.permute.xlu0 %815 }
  0xee   : > { %v838_v33 = vadd.f32 %v821_v31, %v726_v28  ;;  %v837_v34 = vadd.f32 %v816_v32, %v725_v29  ;;  %902 = vxpose.xlu0.c.b16.cont [7/8] (narrow) %v845_v30, 64 }
  0xf0   : > { %v846_v35 = vpack.c.bf16 %v838_v33, %v837_v34 }
  0xf2   : > { %903 = vxpose.xlu0.c.b16.end [8/8] (narrow) %v846_v35, 64 }
 0x13c   : > { %v904_v36 = vpop.trf.xlu0 }
 0x13d   : > { %1073 = vmatmul.mubr.bf16.vlgmr.msra.gmra.mrb[0].mxu0 %v904_v36  ;;  %1703 = vmatprep.mubr.bf16.mxu1 %v904_v36 }
 0x13e   : > { %1082 = vmatprep.mubr.bf16.mxu0 %v1794_v0 }
 0x140   : > { %v905_v37 = vpop.trf.xlu0 }
 0x141   : > { %1704 = vmatmul.mubr.bf16.vlgmr.msra.gmra.mrb[0].mxu1 %v905_v37 }
 0x144   : > { %v906_v38 = vpop.trf.xlu0 }
 0x145   : > { %1083 = vmatmul.mubr.bf16.gmra.mrb[4].mxu0 %v905_v37  ;;  %1707 = vmatprep.mubr.bf16.mxu1 %v906_v38 }
 0x146   : > { %1092 = vmatprep.mubr.bf16.mxu0 %v1794_v0 }
 0x148   : > { %v907_v39 = vpop.trf.xlu0 }
 0x149   : > { %1708 = vmatmul.mubr.bf16.gmra.mrb[4].mxu1 %v907_v39 }
 0x14d   : > { %1093 = vmatmul.mubr.bf16.gmra.mrb[8].mxu0 %v906_v38 }
 0x14e   : > { %1102 = vmatprep.mubr.bf16.mxu0 %v1794_v0 }
 0x155   : > { %1103 = vmatmul.mubr.bf16.gmra.mrb[12].mxu0 %v907_v39 }
 0x210   : > { %v1074_v47 = vpop.f32.mrb[0].mxu0 }
 0x211   : > { %v1076_v49 = vpop.f32.mrb[1].mxu0  ;;  %v1075_v0 = vadd.f32 %v1074_v47, %v2111_v46 }
 0x212   : > { %v1078_v51 = vpop.f32.mrb[2].mxu0  ;;  %v1077_v54 = vadd.f32 %v1076_v49, %v2113_v48 }
 0x213   : > { %v1079_v52 = vadd.f32 %v1078_v51, %v2111_v46  ;;  %v1080_v53 = vpop.f32.mrb[3].mxu0 }
 0x214   : > { %v1081_v55 = vadd.f32 %v1080_v53, %v2113_v48  ;;  %v1705_v56 = vpop.f32.mrb[0].mxu1 }
 0x215   : > { %v1609_v57 = vpack.c.bf16 %v1079_v52, %v1075_v0  ;;  %v1156_v58 = vadd.f32 %v1705_v56, %v892_v50  ;;  %v1147_v59 = vpop.f32.mrb[1].mxu1 }
 0x216   : > { %v1629_v60 = vpack.c.bf16 %v1081_v55, %v1077_v54  ;;  %v1148_v61 = vadd.f32 %v1147_v59, %v892_v50  ;;  %v1706_v62 = vpop.f32.mrb[2].mxu1 }
 0x217   : > { %1610 = vst [vmem:[%s2122_s17] sm:$0xff] %v1609_v57   ;;  %v1159_v63 = vadd.f32 %v1706_v62, %v892_v50  ;;  %v1150_v1 = vpop.f32.mrb[3].mxu1 }
 0x218   : > { %1630 = vst [vmem:[%s2128_s20] sm:$0xff] %v1629_v60   ;;  %v1084_v2 = vpop.f32.mrb[4].mxu0  ;;  %v1151_v3 = vadd.f32 %v1150_v1, %v892_v50 }
 0x219   : > { %v1654_v4 = vpack.c.bf16 %v1159_v63, %v1156_v58  ;;  %v1086_v5 = vpop.f32.mrb[5].mxu0  ;;  %v1085_v8 = vadd.f32 %v1084_v2, %v2111_v46 }
 0x21a   : > { %v1649_v6 = vpack.c.bf16 %v1151_v3, %v1148_v61  ;;  %v1088_v7 = vpop.f32.mrb[6].mxu0  ;;  %v1087_v11 = vadd.f32 %v1086_v5, %v2113_v48 }
 0x21b   : > { %1672 = vst [vmem:[%s2135_s19 + $0x8] sm:$0xff] %v1654_v4   ;;  %v1089_v9 = vadd.f32 %v1088_v7, %v2111_v46  ;;  %v1090_v10 = vpop.f32.mrb[7].mxu0 }
 0x21c   : > { %1650 = vst [vmem:[%s2135_s19] sm:$0xff] %v1649_v6   ;;  %v1091_v12 = vadd.f32 %v1090_v10, %v2113_v48  ;;  %v1709_v13 = vpop.f32.mrb[4].mxu1 }
 0x21d   : > { %v1614_v14 = vpack.c.bf16 %v1089_v9, %v1085_v8  ;;  %v1172_v15 = vadd.f32 %v1709_v13, %v892_v50  ;;  %v1163_v16 = vpop.f32.mrb[5].mxu1 }
 0x21e   : > { %v1634_v17 = vpack.c.bf16 %v1091_v12, %v1087_v11  ;;  %v1164_v18 = vadd.f32 %v1163_v16, %v892_v50  ;;  %v1710_v19 = vpop.f32.mrb[6].mxu1 }
 0x21f   : > { %1666 = vst [vmem:[%s2122_s17 + $0x8] sm:$0xff] %v1614_v14   ;;  %v1175_v20 = vadd.f32 %v1710_v19, %v892_v50  ;;  %v1166_v21 = vpop.f32.mrb[7].mxu1 }
 0x220   : > { %1669 = vst [vmem:[%s2128_s20 + $0x8] sm:$0xff] %v1634_v17   ;;  %v1094_v22 = vpop.f32.mrb[8].mxu0  ;;  %v1167_v23 = vadd.f32 %v1166_v21, %v892_v50 }
 0x221   : > { %v1096_v24 = vpop.f32.mrb[9].mxu0  ;;  %v1664_v25 = vpack.c.bf16 %v1175_v20, %v1172_v15  ;;  %v1095_v28 = vadd.f32 %v1094_v22, %v2111_v46 }
 0x222   : > { %v1098_v26 = vpop.f32.mrb[10].mxu0  ;;  %v1659_v27 = vpack.c.bf16 %v1167_v23, %v1164_v18  ;;  %v1097_v31 = vadd.f32 %v1096_v24, %v2113_v48 }
 0x223   : > { %v1099_v29 = vadd.f32 %v1098_v26, %v2111_v46  ;;  %v1100_v30 = vpop.f32.mrb[11].mxu0  ;;  %1674 = vst [vmem:[%s2135_s19 + $0x18] sm:$0xff] %v1664_v25  }
 0x224   : > { %v1101_v32 = vadd.f32 %v1100_v30, %v2113_v48  ;;  %1673 = vst [vmem:[%s2135_s19 + $0x10] sm:$0xff] %v1659_v27  }
 0x225   : > { %v1619_v33 = vpack.c.bf16 %v1099_v29, %v1095_v28 }
 0x226   : > { %v1639_v34 = vpack.c.bf16 %v1101_v32, %v1097_v31 }
 0x227   : > { %1667 = vst [vmem:[%s2122_s17 + $0x10] sm:$0xff] %v1619_v33  }
 0x228   : > { %1670 = vst [vmem:[%s2128_s20 + $0x10] sm:$0xff] %v1639_v34   ;;  %v1104_v35 = vpop.f32.mrb[12].mxu0 }
 0x229   : > { %v1106_v36 = vpop.f32.mrb[13].mxu0  ;;  %v1105_v38 = vadd.f32 %v1104_v35, %v2111_v46 }
 0x22a   : > { %v1108_v37 = vpop.f32.mrb[14].mxu0  ;;  %v1107_v41 = vadd.f32 %v1106_v36, %v2113_v48 }
 0x22b   : > { %v1109_v39 = vadd.f32 %v1108_v37, %v2111_v46  ;;  %v1110_v40 = vpop.f32.mrb[15].mxu0 }
 0x22c   : > { %v1111_v42 = vadd.f32 %v1110_v40, %v2113_v48 }
 0x22d   : > { %v1624_v43 = vpack.c.bf16 %v1109_v39, %v1105_v38 }
 0x22e   : > { %v1644_v44 = vpack.c.bf16 %v1111_v42, %v1107_v41 }
 0x22f   : > { %1668 = vst [vmem:[%s2122_s17 + $0x18] sm:$0xff] %v1624_v43  }
 0x230   : > { %1671 = vst [vmem:[%s2128_s20 + $0x18] sm:$0xff] %v1644_v44  }
 0x231 PF: > { %s20_s11 = sadd.s32 1, %s1792_s11   ;;  %s2178_s30 = smov %s1788_s10 }
 0x232   : > { %p17_p5 = scmp.ge.s32.totalorder %s20_s11, 4   ;;  %s2179_s10 = smov %s2181_s12 }
 0x234   :  { %19 = sbr.rel (!%p17_p5) target bundleno = 2 (0x2), region = 108 }

</bundles_post_ra>
